<compile_context>
chip_gen: v5e
topology: v5e:2x2
jax: 0.10.0
libtpu: 0.0.40
codegen_flags: <defaults>
</compile_context>

<pallas_src>
import functools

import jax
import jax.numpy as jnp
from jax.experimental import pallas as pl
from jax.experimental.pallas import tpu as pltpu

F32 = jnp.float32
BF16 = jnp.bfloat16
VMEM = pltpu.MemorySpace.VMEM
NEG_BIG = -1e30
VMEM_LIMIT = 32 * 1024 * 1024  # explicit scoped-VMEM budget (safe on v5e/v6e/v7x)


# ----------------------------------------------------------------------------
# in-kernel math helpers (all f32 elementwise; bf16 only on matmul operands)
# ----------------------------------------------------------------------------
def _silu(y):
    return y * jax.nn.sigmoid(y)


def _elu(y):
    return jnp.where(y > 0, y, jnp.exp(y) - 1.0)


def _leaky_relu(y, slope=0.01):
    return jnp.where(y > 0, y, slope * y)


def _layernorm(x, g, b, eps=1e-5):
    mu = jnp.mean(x, axis=-1, keepdims=True)
    xc = x - mu
    var = jnp.mean(xc * xc, axis=-1, keepdims=True)
    return xc * jax.lax.rsqrt(var + eps) * g + b


# ----------------------------------------------------------------------------
# Kernel 1: fused pre-conv (node Linear+SiLU and edge Linear+SiLU)
# ----------------------------------------------------------------------------
def _pre_conv_kernel(x_ref, e_ref, wn_ref, bn_ref, we_ref, be_ref,
                     xo_ref, eo_ref):
    xo_ref[...] = _silu(
        jnp.dot(x_ref[...], wn_ref[...], preferred_element_type=F32)
        + bn_ref[...])
    eo_ref[...] = _silu(
        jnp.dot(e_ref[...], we_ref[...], preferred_element_type=F32)
        + be_ref[...])


# ----------------------------------------------------------------------------
# Kernel 2: ALL local attention blocks, one grid step per layer.
#   x is carried in the resident output block (constant out index_map).
#   LayerNorm -> lin_l / lin_r / lin_edge -> GATv2 message, per-segment-max
#   softmax normalized AFTER aggregation -> GeneralGLU (ELU gate).
# ----------------------------------------------------------------------------
def _att_layers_kernel(x0_ref, e_ref, src_oh_ref, tgt_oh_ref, tgt_oh_t_ref,
                       ln_g, ln_b, l_w, l_b, r_w, r_b, e_w, att, bias,
                       gwx_v, gwx_g, gwg_v, gwg_g, gb_v, gb_g,
                       xo_ref):
    l = pl.program_id(0)

    @pl.when(l == 0)
    def _init():
        xo_ref[...] = x0_ref[...]

    x = xo_ref[...]                                                  # (N,C)
    xn = _layernorm(x, ln_g[...], ln_b[...])

    # separate matmul outputs (no lane-interior slices of a fused (N,2C) tile)
    xl = jnp.dot(xn, l_w[...], preferred_element_type=F32) + l_b[...]   # (N,C)
    xr = jnp.dot(xn, r_w[...], preferred_element_type=F32) + r_b[...]   # (N,C)
    ef = jnp.dot(e_ref[...], e_w[...], preferred_element_type=F32)      # (E,C)

    src_oh = src_oh_ref[...]                                          # (E,N) bf16
    tgt_oh = tgt_oh_ref[...]                                          # (E,N) bf16
    tgt_oh_t = tgt_oh_t_ref[...]                                      # (N,E) bf16

    # per-edge gather of source/target features via bf16 incidence matmuls
    xj = jnp.dot(src_oh, xl.astype(BF16), preferred_element_type=F32)  # (E,C)
    xi = jnp.dot(tgt_oh, xr.astype(BF16), preferred_element_type=F32)  # (E,C)

    s = _leaky_relu(xi + xj + ef)                                      # (E,C)
    # logit reduce on the MXU (att stored as a (C,1) column)
    logits = jnp.dot(s, att[...], preferred_element_type=F32)          # (E,1)

    # per-segment (per-target) max for numerical stability
    masked = jnp.where(tgt_oh > 0, logits, NEG_BIG)                    # (E,N)
    m_t = jnp.max(masked, axis=0, keepdims=True)                       # (1,N)
    edge_max = jnp.sum(tgt_oh.astype(F32) * m_t, axis=-1,
                       keepdims=True)                                  # (E,1)
    w = jnp.exp(logits - edge_max)                                     # (E,1)

    # softmax normalized AFTER aggregation; scatter-add via pre-transposed
    # incidence matrix (plain jnp.dot, no in-kernel transpose).
    num = jnp.dot(tgt_oh_t, (xj * w).astype(BF16),
                  preferred_element_type=F32)                          # (N,C)
    den = jnp.dot(tgt_oh_t, w.astype(BF16),
                  preferred_element_type=F32)                          # (N,1)
    inv = pl.reciprocal(jnp.where(den > 0, den, 1.0), approx=True)     # EUP
    g = num * inv + bias[...]                                          # (N,C)

    # GeneralGLU on cat([xn, g]) with input- and output-split weights
    vals = (jnp.dot(xn, gwx_v[...], preferred_element_type=F32)
            + jnp.dot(g, gwg_v[...], preferred_element_type=F32) + gb_v[...])
    gates = (jnp.dot(xn, gwx_g[...], preferred_element_type=F32)
             + jnp.dot(g, gwg_g[...], preferred_element_type=F32) + gb_g[...])
    xo_ref[...] = vals * _elu(gates)


# ----------------------------------------------------------------------------
# Kernel 3: fused global block + head
#   global_add_pool + relu -> bipartite GATv2 (src = arange(N), so x_j ==
#   lin_l(x); no identity gather) -> GeneralGLU -> LayerNorm -> post MLP
#   (SiLU) -> output Linear.
# ----------------------------------------------------------------------------
def _global_head_kernel(*refs, n_post):
    (x_ref, boh_ref, boh_t_ref,
     gl_w, gl_b, gr_w, gr_b, g_att, g_bias,
     gwp_v, gwp_g, gwg_v, gwg_g, gb_v, gb_g,
     gn_g, gn_b) = refs[:17]
    rest = refs[17:]
    post = rest[:2 * n_post]
    out_w, out_b, o_ref = rest[2 * n_post:]

    x = x_ref[...]                                                     # (N,C)
    boh = boh_ref[...]                                                 # (N,B) bf16
    boh_t = boh_t_ref[...]                                             # (B,N) bf16

    # global_add_pool(x, batch).relu()
    pooled = jnp.maximum(
        jnp.dot(boh_t, x.astype(BF16), preferred_element_type=F32), 0.0)  # (B,C)

    xl = jnp.dot(x, gl_w[...], preferred_element_type=F32) + gl_b[...]     # (N,C)
    xr = jnp.dot(pooled, gr_w[...], preferred_element_type=F32) + gr_b[...]
    xi = jnp.dot(boh, xr.astype(BF16), preferred_element_type=F32)         # (N,C)

    s = _leaky_relu(xi + xl)
    logits = jnp.dot(s, g_att[...], preferred_element_type=F32)            # (N,1)

    # per-graph max for stability
    masked = jnp.where(boh > 0, logits, NEG_BIG)                           # (N,B)
    m_b = jnp.max(masked, axis=0, keepdims=True)                           # (1,B)
    node_max = jnp.sum(boh.astype(F32) * m_b, axis=-1, keepdims=True)      # (N,1)
    w = jnp.exp(logits - node_max)

    num = jnp.dot(boh_t, (xl * w).astype(BF16), preferred_element_type=F32)  # (B,C)
    den = jnp.dot(boh_t, w.astype(BF16), preferred_element_type=F32)         # (B,1)
    inv = pl.reciprocal(jnp.where(den > 0, den, 1.0), approx=True)
    g = num * inv + g_bias[...]

    # GeneralGLU on cat([pooled, g])
    vals = (jnp.dot(pooled, gwp_v[...], preferred_element_type=F32)
            + jnp.dot(g, gwg_v[...], preferred_element_type=F32) + gb_v[...])
    gates = (jnp.dot(pooled, gwp_g[...], preferred_element_type=F32)
             + jnp.dot(g, gwg_g[...], preferred_element_type=F32) + gb_g[...])
    out = vals * _elu(gates)

    xg = _layernorm(out, gn_g[...], gn_b[...])
    for i in range(n_post):
        xg = _silu(jnp.dot(xg, post[2 * i][...], preferred_element_type=F32)
                   + post[2 * i + 1][...])
    o_ref[...] = (jnp.dot(xg, out_w[...], preferred_element_type=F32)
                  + out_b[...])


# ----------------------------------------------------------------------------
# Parameter construction (deterministic, synthetic)
# ----------------------------------------------------------------------------
def _glorot(key, shape):
    fan_in, fan_out = shape[-2], shape[-1]
    lim = (6.0 / (fan_in + fan_out)) ** 0.5
    return jax.random.uniform(key, shape, F32, -lim, lim)


_ATT_WEIGHT_ORDER = ("ln_g", "ln_b", "lin_l_w", "lin_l_b", "lin_r_w", "lin_r_b",
                     "lin_e_w", "att", "bias", "gwx_v", "gwx_g", "gwg_v",
                     "gwg_g", "gb_v", "gb_g")


def init_params(key, in_channels, hidden, out_channels, edge_dim,
                layers_attention=4, post_conv_layers=2):
    C = hidden
    L = layers_attention - 1
    keys = iter(jax.random.split(key, 64))
    p = {}

    # pre-conv (pre_conv_layers = 1)
    p["pre_node_w"] = _glorot(next(keys), (in_channels, C))
    p["pre_node_b"] = jnp.zeros((1, C), F32)
    p["pre_edge_w"] = _glorot(next(keys), (edge_dim, C))
    p["pre_edge_b"] = jnp.zeros((1, C), F32)

    def stack_g(shape):
        return _glorot(next(keys), (L,) + shape)

    # per-layer weights stacked on a leading "layer" axis for the grid kernel
    p["att_stack"] = {
        "ln_g": jnp.ones((L, 1, C), F32),
        "ln_b": jnp.zeros((L, 1, C), F32),
        "lin_l_w": stack_g((C, C)),
        "lin_l_b": jnp.zeros((L, 1, C), F32),
        "lin_r_w": stack_g((C, C)),
        "lin_r_b": jnp.zeros((L, 1, C), F32),
        "lin_e_w": stack_g((C, C)),            # GATv2 lin_edge has no bias
        "att": stack_g((C, 1)),                # stored as a column (MXU reduce)
        "bias": jnp.zeros((L, 1, C), F32),
        # GeneralGLU weight (2C -> 2C) split input-wise (x | g) and
        # output-wise (values | gates) so the kernel never lane-slices.
        "gwx_v": stack_g((C, C)),
        "gwx_g": stack_g((C, C)),
        "gwg_v": stack_g((C, C)),
        "gwg_g": stack_g((C, C)),
        "gb_v": jnp.zeros((L, 1, C), F32),
        "gb_g": jnp.ones((L, 1, C), F32),      # GeneralGLU gate bias = 1.0
    }

    # global (bipartite) attention, heads = 1, no edge_attr
    p["g_lin_l_w"] = _glorot(next(keys), (C, C))
    p["g_lin_l_b"] = jnp.zeros((1, C), F32)
    p["g_lin_r_w"] = _glorot(next(keys), (C, C))
    p["g_lin_r_b"] = jnp.zeros((1, C), F32)
    p["g_att"] = _glorot(next(keys), (C, 1))
    p["g_bias"] = jnp.zeros((1, C), F32)
    p["g_gwp_v"] = _glorot(next(keys), (C, C))
    p["g_gwp_g"] = _glorot(next(keys), (C, C))
    p["g_gwg_v"] = _glorot(next(keys), (C, C))
    p["g_gwg_g"] = _glorot(next(keys), (C, C))
    p["g_gb_v"] = jnp.zeros((1, C), F32)
    p["g_gb_g"] = jnp.ones((1, C), F32)
    p["gn_g"] = jnp.ones((1, C), F32)
    p["gn_b"] = jnp.zeros((1, C), F32)

    p["post"] = [(_glorot(next(keys), (C, C)), jnp.zeros((1, C), F32))
                 for _ in range(post_conv_layers)]
    p["out_w"] = _glorot(next(keys), (C, out_channels))
    p["out_b"] = jnp.zeros((1, out_channels), F32)
    return p


# ----------------------------------------------------------------------------
# GATom forward (3 pallas_call launches total)
# ----------------------------------------------------------------------------
def gatom_forward(params, x, edge_attr, src_oh, tgt_oh, tgt_oh_t,
                  batch_oh, batch_oh_t):
    N = x.shape[0]
    E = edge_attr.shape[0]
    B = batch_oh.shape[1]
    C = params["pre_node_w"].shape[1]
    in_c = x.shape[1]
    e_c = edge_attr.shape[1]

    cp_plain = pltpu.CompilerParams(vmem_limit_bytes=VMEM_LIMIT)

    # ---- launch 1: fused pre-conv (node + edge Linear+SiLU) -----------------
    pre_cost = pl.CostEstimate(
        flops=2 * (N * in_c * C + E * e_c * C),
        transcendentals=(N + E) * C,
        bytes_accessed=4 * (N * in_c + E * e_c + (in_c + e_c + 2) * C
                            + (N + E) * C))
    x, e = pl.pallas_call(
        _pre_conv_kernel,
        out_shape=(jax.ShapeDtypeStruct((N, C), F32),
                   jax.ShapeDtypeStruct((E, C), F32)),
        in_specs=[pl.BlockSpec(memory_space=VMEM)] * 6,
        out_specs=(pl.BlockSpec(memory_space=VMEM),
                   pl.BlockSpec(memory_space=VMEM)),
        compiler_params=cp_plain,
        cost_estimate=pre_cost,
    )(x, edge_attr, params["pre_node_w"], params["pre_node_b"],
      params["pre_edge_w"], params["pre_edge_b"])

    # ---- launch 2: all local attention blocks in one grid-iterated call -----
    stack = params["att_stack"]
    L = stack["ln_g"].shape[0]
    weights = [stack[k] for k in _ATT_WEIGHT_ORDER]

    def _const(shape):
        return pl.BlockSpec(shape, lambda l: (0, 0))

    def _per_layer(arr):
        return pl.BlockSpec((None, arr.shape[1], arr.shape[2]),
                            lambda l: (l, 0, 0))

    att_cost = pl.CostEstimate(
        flops=L * (2 * C * C * (6 * N + E) + 6 * E * N * C + 2 * E * C
                   + 2 * N * E),
        transcendentals=L * (E + N + N * C),
        bytes_accessed=(4 * (2 * N * C + E * C) + 2 * 3 * E * N
                        + 4 * L * (9 * C * C + 7 * C)))

    x = pl.pallas_call(
        _att_layers_kernel,
        grid=(L,),
        out_shape=jax.ShapeDtypeStruct((N, C), F32),
        in_specs=([_const((N, C)), _const((E, C)), _const((E, N)),
                   _const((E, N)), _const((N, E))]
                  + [_per_layer(w) for w in weights]),
        out_specs=pl.BlockSpec((N, C), lambda l: (0, 0)),  # resident carry
        compiler_params=pltpu.CompilerParams(
            dimension_semantics=("arbitrary",),
            vmem_limit_bytes=VMEM_LIMIT),
        cost_estimate=att_cost,
    )(x, e, src_oh, tgt_oh, tgt_oh_t, *weights)

    # ---- launch 3: global attention + GLU + LayerNorm + post MLP + output ---
    n_post = len(params["post"])
    post_flat = []
    for hw, hb in params["post"]:
        post_flat += [hw, hb]
    out_c = params["out_w"].shape[1]

    head_cost = pl.CostEstimate(
        flops=2 * (B * N * C + N * C * C + B * C * C + N * B * C + N * C
                   + 2 * B * N * C + 4 * B * C * C + n_post * B * C * C
                   + B * C * out_c),
        transcendentals=N + B + (n_post + 2) * B * C,
        bytes_accessed=(4 * (N * C + B * out_c) + 2 * 2 * N * B
                        + 4 * (8 + n_post) * C * C))

    out = pl.pallas_call(
        functools.partial(_global_head_kernel, n_post=n_post),
        out_shape=jax.ShapeDtypeStruct((B, out_c), F32),
        in_specs=[pl.BlockSpec(memory_space=VMEM)] * (19 + 2 * n_post),
        out_specs=pl.BlockSpec(memory_space=VMEM),
        compiler_params=cp_plain,
        cost_estimate=head_cost,
    )(x, batch_oh, batch_oh_t,
      params["g_lin_l_w"], params["g_lin_l_b"],
      params["g_lin_r_w"], params["g_lin_r_b"],
      params["g_att"], params["g_bias"],
      params["g_gwp_v"], params["g_gwp_g"],
      params["g_gwg_v"], params["g_gwg_g"],
      params["g_gb_v"], params["g_gb_g"],
      params["gn_g"], params["gn_b"],
      *post_flat,
      params["out_w"], params["out_b"])

    if out.shape[1] == 1:
        return out.reshape(-1)
    return out


# ----------------------------------------------------------------------------
# Demo
# ----------------------------------------------------------------------------
if __name__ == "__main__":
    key = jax.random.PRNGKey(0)
    k_param, k_x, k_e = jax.random.split(key, 3)

    # model config (consistent with module defaults: heads=1, 4 attention layers)
    in_channels, hidden, out_channels, edge_dim = 16, 32, 1, 8
    layers_attention, post_conv_layers = 4, 2

    # synthetic batch of 2 graphs, 6 nodes each, bidirectional ring edges
    nodes_per_graph, n_graphs = 6, 2
    n_nodes = nodes_per_graph * n_graphs
    src_list, tgt_list, batch_list = [], [], []
    for gidx in range(n_graphs):
        base = gidx * nodes_per_graph
        for i in range(nodes_per_graph):
            j = (i + 1) % nodes_per_graph
            src_list += [base + i, base + j]
            tgt_list += [base + j, base + i]
        batch_list += [gidx] * nodes_per_graph
    src = jnp.array(src_list, jnp.int32)
    tgt = jnp.array(tgt_list, jnp.int32)
    batch = jnp.array(batch_list, jnp.int32)
    n_edges = src.shape[0]

    x = jax.random.normal(k_x, (n_nodes, in_channels), F32)
    edge_attr = jax.random.normal(k_e, (n_edges, edge_dim), F32)

    # bf16 one-hot incidence matrices (0/1 exact) + host-side transposes so the
    # in-kernel scatter-adds are plain jnp.dot (no dim-0 contraction).
    src_oh = jax.nn.one_hot(src, n_nodes, dtype=BF16)          # (E, N)
    tgt_oh = jax.nn.one_hot(tgt, n_nodes, dtype=BF16)          # (E, N)
    tgt_oh_t = jnp.transpose(tgt_oh)                           # (N, E)
    batch_oh = jax.nn.one_hot(batch, n_graphs, dtype=BF16)     # (N, B)
    batch_oh_t = jnp.transpose(batch_oh)                       # (B, N)

    params = init_params(k_param, in_channels, hidden, out_channels, edge_dim,
                         layers_attention, post_conv_layers)

    fwd = jax.jit(gatom_forward)
    out = fwd(params, x, edge_attr, src_oh, tgt_oh, tgt_oh_t,
              batch_oh, batch_oh_t)
    out = jax.block_until_ready(out)
    assert out.shape == (n_graphs,), out.shape
    assert bool(jnp.all(jnp.isfinite(out)))
    print("KERNEL_OK")
</pallas_src>

<mosaic_0001>
module attributes {stable_mosaic.version = 11 : i64} {
  func.func @_pre_conv_kernel(%arg0: memref<12x16xf32, #tpu.memory_space<vmem>>, %arg1: memref<24x8xf32, #tpu.memory_space<vmem>>, %arg2: memref<16x32xf32, #tpu.memory_space<vmem>>, %arg3: memref<1x32xf32, #tpu.memory_space<vmem>>, %arg4: memref<8x32xf32, #tpu.memory_space<vmem>>, %arg5: memref<1x32xf32, #tpu.memory_space<vmem>>, %arg6: memref<12x32xf32, #tpu.memory_space<vmem>>, %arg7: memref<24x32xf32, #tpu.memory_space<vmem>>) attributes {dimension_semantics = [], scalar_prefetch = 0 : i64, scratch_operands = 0 : i64, tpu.core_type = #tpu.core_type<tc>} {
    %c0 = arith.constant 0 : index
    %c0_0 = arith.constant 0 : index
    %0 = vector.load %arg0[%c0, %c0_0] : memref<12x16xf32, #tpu.memory_space<vmem>>, vector<12x16xf32>
    %c0_1 = arith.constant 0 : index
    %c0_2 = arith.constant 0 : index
    %1 = vector.load %arg2[%c0_1, %c0_2] : memref<16x32xf32, #tpu.memory_space<vmem>>, vector<16x32xf32>
    %cst = arith.constant dense<0.000000e+00> : vector<12x32xf32>
    %2 = tpu.matmul %0, %1, %cst {dimension_numbers = #tpu.dot_dimension_numbers<[1], [0], [0], [1], [0, 0, 1, 1], [], []>} : vector<12x16xf32>, vector<16x32xf32>, vector<12x32xf32> -> vector<12x32xf32>
    %c0_3 = arith.constant 0 : index
    %c0_4 = arith.constant 0 : index
    %3 = vector.load %arg3[%c0_3, %c0_4] : memref<1x32xf32, #tpu.memory_space<vmem>>, vector<1x32xf32>
    %4 = vector.broadcast %3 : vector<1x32xf32> to vector<12x32xf32>
    %5 = arith.addf %2, %4 : vector<12x32xf32>
    %6 = arith.negf %5 : vector<12x32xf32>
    %7 = math.exp %6 : vector<12x32xf32>
    %cst_5 = arith.constant 1.000000e+00 : f32
    %8 = vector.broadcast %cst_5 : f32 to vector<12x32xf32>
    %9 = arith.addf %8, %7 : vector<12x32xf32>
    %10 = arith.divf %8, %9 : vector<12x32xf32>
    %11 = arith.mulf %5, %10 : vector<12x32xf32>
    %c0_6 = arith.constant 0 : index
    %c0_7 = arith.constant 0 : index
    %12 = vector.load %arg6[%c0_6, %c0_7] : memref<12x32xf32, #tpu.memory_space<vmem>>, vector<12x32xf32>
    tpu.vector_store %arg6[%c0_6, %c0_7], %11 {strides = array<i32>} : memref<12x32xf32, #tpu.memory_space<vmem>>, vector<12x32xf32>,
    %c0_8 = arith.constant 0 : index
    %c0_9 = arith.constant 0 : index
    %13 = vector.load %arg1[%c0_8, %c0_9] : memref<24x8xf32, #tpu.memory_space<vmem>>, vector<24x8xf32>
    %c0_10 = arith.constant 0 : index
    %c0_11 = arith.constant 0 : index
    %14 = vector.load %arg4[%c0_10, %c0_11] : memref<8x32xf32, #tpu.memory_space<vmem>>, vector<8x32xf32>
    %cst_12 = arith.constant dense<0.000000e+00> : vector<24x32xf32>
    %15 = tpu.matmul %13, %14, %cst_12 {dimension_numbers = #tpu.dot_dimension_numbers<[1], [0], [0], [1], [0, 0, 1, 1], [], []>} : vector<24x8xf32>, vector<8x32xf32>, vector<24x32xf32> -> vector<24x32xf32>
    %c0_13 = arith.constant 0 : index
    %c0_14 = arith.constant 0 : index
    %16 = vector.load %arg5[%c0_13, %c0_14] : memref<1x32xf32, #tpu.memory_space<vmem>>, vector<1x32xf32>
    %17 = vector.broadcast %16 : vector<1x32xf32> to vector<24x32xf32>
    %18 = arith.addf %15, %17 : vector<24x32xf32>
    %19 = arith.negf %18 : vector<24x32xf32>
    %20 = math.exp %19 : vector<24x32xf32>
    %cst_15 = arith.constant 1.000000e+00 : f32
    %21 = vector.broadcast %cst_15 : f32 to vector<24x32xf32>
    %22 = arith.addf %21, %20 : vector<24x32xf32>
    %23 = arith.divf %21, %22 : vector<24x32xf32>
    %24 = arith.mulf %18, %23 : vector<24x32xf32>
    %c0_16 = arith.constant 0 : index
    %c0_17 = arith.constant 0 : index
    %25 = vector.load %arg7[%c0_16, %c0_17] : memref<24x32xf32, #tpu.memory_space<vmem>>, vector<24x32xf32>
    tpu.vector_store %arg7[%c0_16, %c0_17], %24 {strides = array<i32>} : memref<24x32xf32, #tpu.memory_space<vmem>>, vector<24x32xf32>,
    return
  }
}

module attributes {stable_mosaic.version = 11 : i64} {
  func.func @_att_layers_kernel(%arg0: i32, %arg1: memref<12x32xf32, #tpu.memory_space<vmem>>, %arg2: memref<24x32xf32, #tpu.memory_space<vmem>>, %arg3: memref<24x12xbf16, #tpu.memory_space<vmem>>, %arg4: memref<24x12xbf16, #tpu.memory_space<vmem>>, %arg5: memref<12x24xbf16, #tpu.memory_space<vmem>>, %arg6: memref<1x1x32xf32, #tpu.memory_space<vmem>>, %arg7: memref<1x1x32xf32, #tpu.memory_space<vmem>>, %arg8: memref<1x32x32xf32, #tpu.memory_space<vmem>>, %arg9: memref<1x1x32xf32, #tpu.memory_space<vmem>>, %arg10: memref<1x32x32xf32, #tpu.memory_space<vmem>>, %arg11: memref<1x1x32xf32, #tpu.memory_space<vmem>>, %arg12: memref<1x32x32xf32, #tpu.memory_space<vmem>>, %arg13: memref<1x32x1xf32, #tpu.memory_space<vmem>>, %arg14: memref<1x1x32xf32, #tpu.memory_space<vmem>>, %arg15: memref<1x32x32xf32, #tpu.memory_space<vmem>>, %arg16: memref<1x32x32xf32, #tpu.memory_space<vmem>>, %arg17: memref<1x32x32xf32, #tpu.memory_space<vmem>>, %arg18: memref<1x32x32xf32, #tpu.memory_space<vmem>>, %arg19: memref<1x1x32xf32, #tpu.memory_space<vmem>>, %arg20: memref<1x1x32xf32, #tpu.memory_space<vmem>>, %arg21: memref<12x32xf32, #tpu.memory_space<vmem>>) attributes {dimension_semantics = [#tpu.dimension_semantics<arbitrary>], iteration_bounds = array<i64: 3>, scalar_prefetch = 0 : i64, scratch_operands = 0 : i64, tpu.core_type = #tpu.core_type<tc>, window_params = [{pipeline_mode = #tpu.pipeline_mode<synchronous>, transform_indices = @transform_0, window_bounds = array<i64: 12, 32>}, {pipeline_mode = #tpu.pipeline_mode<synchronous>, transform_indices = @transform_1, window_bounds = array<i64: 24, 32>}, {pipeline_mode = #tpu.pipeline_mode<synchronous>, transform_indices = @transform_2, window_bounds = array<i64: 24, 12>}, {pipeline_mode = #tpu.pipeline_mode<synchronous>, transform_indices = @transform_3, window_bounds = array<i64: 24, 12>}, {pipeline_mode = #tpu.pipeline_mode<synchronous>, transform_indices = @transform_4, window_bounds = array<i64: 12, 24>}, {transform_indices = @transform_5, window_bounds = array<i64: 1, 1, 32>}, {transform_indices = @transform_6, window_bounds = array<i64: 1, 1, 32>}, {transform_indices = @transform_7, window_bounds = array<i64: 1, 32, 32>}, {transform_indices = @transform_8, window_bounds = array<i64: 1, 1, 32>}, {transform_indices = @transform_9, window_bounds = array<i64: 1, 32, 32>}, {transform_indices = @transform_10, window_bounds = array<i64: 1, 1, 32>}, {transform_indices = @transform_11, window_bounds = array<i64: 1, 32, 32>}, {transform_indices = @transform_12, window_bounds = array<i64: 1, 32, 1>}, {transform_indices = @transform_13, window_bounds = array<i64: 1, 1, 32>}, {transform_indices = @transform_14, window_bounds = array<i64: 1, 32, 32>}, {transform_indices = @transform_15, window_bounds = array<i64: 1, 32, 32>}, {transform_indices = @transform_16, window_bounds = array<i64: 1, 32, 32>}, {transform_indices = @transform_17, window_bounds = array<i64: 1, 32, 32>}, {transform_indices = @transform_18, window_bounds = array<i64: 1, 1, 32>}, {transform_indices = @transform_19, window_bounds = array<i64: 1, 1, 32>}, {pipeline_mode = #tpu.pipeline_mode<synchronous>, transform_indices = @transform_20, window_bounds = array<i64: 12, 32>}]} {
    %c0_i32 = arith.constant 0 : i32
    %0 = arith.cmpi eq, %arg0, %c0_i32 : i32
    %1 = arith.extui %0 : i1 to i32
    %c0_i32_0 = arith.constant 0 : i32
    %2 = arith.cmpi ne, %1, %c0_i32_0 : i32
    scf.if %2 {
      %c0_83 = arith.constant 0 : index
      %c0_84 = arith.constant 0 : index
      %125 = vector.load %arg1[%c0_83, %c0_84] : memref<12x32xf32, #tpu.memory_space<vmem>>, vector<12x32xf32>
      %c0_85 = arith.constant 0 : index
      %c0_86 = arith.constant 0 : index
      %126 = vector.load %arg21[%c0_85, %c0_86] : memref<12x32xf32, #tpu.memory_space<vmem>>, vector<12x32xf32>
      tpu.vector_store %arg21[%c0_85, %c0_86], %125 {strides = array<i32>} : memref<12x32xf32, #tpu.memory_space<vmem>>, vector<12x32xf32>,
    } else {
    }
    %c0 = arith.constant 0 : index
    %c0_1 = arith.constant 0 : index
    %3 = vector.load %arg21[%c0, %c0_1] : memref<12x32xf32, #tpu.memory_space<vmem>>, vector<12x32xf32>
    %c0_2 = arith.constant 0 : index
    %c0_3 = arith.constant 0 : index
    %c0_4 = arith.constant 0 : index
    %4 = vector.load %arg6[%c0_2, %c0_3, %c0_4] : memref<1x1x32xf32, #tpu.memory_space<vmem>>, vector<1x1x32xf32>
    %5 = vector.shape_cast %4 : vector<1x1x32xf32> to vector<1x32xf32>
    %c0_5 = arith.constant 0 : index
    %c0_6 = arith.constant 0 : index
    %c0_7 = arith.constant 0 : index
    %6 = vector.load %arg7[%c0_5, %c0_6, %c0_7] : memref<1x1x32xf32, #tpu.memory_space<vmem>>, vector<1x1x32xf32>
    %7 = vector.shape_cast %6 : vector<1x1x32xf32> to vector<1x32xf32>
    %cst = arith.constant dense<0.000000e+00> : vector<12xf32>
    %8 = vector.multi_reduction <add>, %3, %cst [1] : vector<12x32xf32> to vector<12xf32>
    %9 = vector.shape_cast %8 : vector<12xf32> to vector<12x1xf32>
    %cst_8 = arith.constant 3.200000e+01 : f32
    %10 = vector.broadcast %cst_8 : f32 to vector<12x1xf32>
    %11 = arith.divf %9, %10 : vector<12x1xf32>
    %12 = vector.broadcast %11 : vector<12x1xf32> to vector<12x32xf32>
    %13 = arith.subf %3, %12 : vector<12x32xf32>
    %14 = arith.mulf %13, %13 : vector<12x32xf32>
    %cst_9 = arith.constant dense<0.000000e+00> : vector<12xf32>
    %15 = vector.multi_reduction <add>, %14, %cst_9 [1] : vector<12x32xf32> to vector<12xf32>
    %16 = vector.shape_cast %15 : vector<12xf32> to vector<12x1xf32>
    %cst_10 = arith.constant 3.200000e+01 : f32
    %17 = vector.broadcast %cst_10 : f32 to vector<12x1xf32>
    %18 = arith.divf %16, %17 : vector<12x1xf32>
    %cst_11 = arith.constant 9.99999974E-6 : f32
    %19 = vector.broadcast %cst_11 : f32 to vector<12x1xf32>
    %20 = arith.addf %18, %19 : vector<12x1xf32>
    %21 = math.rsqrt %20 : vector<12x1xf32>
    %22 = vector.broadcast %21 : vector<12x1xf32> to vector<12x32xf32>
    %23 = arith.mulf %13, %22 : vector<12x32xf32>
    %24 = vector.broadcast %5 : vector<1x32xf32> to vector<12x32xf32>
    %25 = arith.mulf %23, %24 : vector<12x32xf32>
    %26 = vector.broadcast %7 : vector<1x32xf32> to vector<12x32xf32>
    %27 = arith.addf %25, %26 : vector<12x32xf32>
    %c0_12 = arith.constant 0 : index
    %c0_13 = arith.constant 0 : index
    %c0_14 = arith.constant 0 : index
    %28 = vector.load %arg8[%c0_12, %c0_13, %c0_14] : memref<1x32x32xf32, #tpu.memory_space<vmem>>, vector<1x32x32xf32>
    %29 = vector.shape_cast %28 : vector<1x32x32xf32> to vector<32x32xf32>
    %cst_15 = arith.constant dense<0.000000e+00> : vector<12x32xf32>
    %30 = tpu.matmul %27, %29, %cst_15 {dimension_numbers = #tpu.dot_dimension_numbers<[1], [0], [0], [1], [0, 0, 1, 1], [], []>} : vector<12x32xf32>, vector<32x32xf32>, vector<12x32xf32> -> vector<12x32xf32>
    %c0_16 = arith.constant 0 : index
    %c0_17 = arith.constant 0 : index
    %c0_18 = arith.constant 0 : index
    %31 = vector.load %arg9[%c0_16, %c0_17, %c0_18] : memref<1x1x32xf32, #tpu.memory_space<vmem>>, vector<1x1x32xf32>
    %32 = vector.shape_cast %31 : vector<1x1x32xf32> to vector<1x32xf32>
    %33 = vector.broadcast %32 : vector<1x32xf32> to vector<12x32xf32>
    %34 = arith.addf %30, %33 : vector<12x32xf32>
    %c0_19 = arith.constant 0 : index
    %c0_20 = arith.constant 0 : index
    %c0_21 = arith.constant 0 : index
    %35 = vector.load %arg10[%c0_19, %c0_20, %c0_21] : memref<1x32x32xf32, #tpu.memory_space<vmem>>, vector<1x32x32xf32>
    %36 = vector.shape_cast %35 : vector<1x32x32xf32> to vector<32x32xf32>
    %cst_22 = arith.constant dense<0.000000e+00> : vector<12x32xf32>
    %37 = tpu.matmul %27, %36, %cst_22 {dimension_numbers = #tpu.dot_dimension_numbers<[1], [0], [0], [1], [0, 0, 1, 1], [], []>} : vector<12x32xf32>, vector<32x32xf32>, vector<12x32xf32> -> vector<12x32xf32>
    %c0_23 = arith.constant 0 : index
    %c0_24 = arith.constant 0 : index
    %c0_25 = arith.constant 0 : index
    %38 = vector.load %arg11[%c0_23, %c0_24, %c0_25] : memref<1x1x32xf32, #tpu.memory_space<vmem>>, vector<1x1x32xf32>
    %39 = vector.shape_cast %38 : vector<1x1x32xf32> to vector<1x32xf32>
    %40 = vector.broadcast %39 : vector<1x32xf32> to vector<12x32xf32>
    %41 = arith.addf %37, %40 : vector<12x32xf32>
    %c0_26 = arith.constant 0 : index
    %c0_27 = arith.constant 0 : index
    %42 = vector.load %arg2[%c0_26, %c0_27] : memref<24x32xf32, #tpu.memory_space<vmem>>, vector<24x32xf32>
    %c0_28 = arith.constant 0 : index
    %c0_29 = arith.constant 0 : index
    %c0_30 = arith.constant 0 : index
    %43 = vector.load %arg12[%c0_28, %c0_29, %c0_30] : memref<1x32x32xf32, #tpu.memory_space<vmem>>, vector<1x32x32xf32>
    %44 = vector.shape_cast %43 : vector<1x32x32xf32> to vector<32x32xf32>
    %cst_31 = arith.constant dense<0.000000e+00> : vector<24x32xf32>
    %45 = tpu.matmul %42, %44, %cst_31 {dimension_numbers = #tpu.dot_dimension_numbers<[1], [0], [0], [1], [0, 0, 1, 1], [], []>} : vector<24x32xf32>, vector<32x32xf32>, vector<24x32xf32> -> vector<24x32xf32>
    %c0_32 = arith.constant 0 : index
    %c0_33 = arith.constant 0 : index
    %46 = vector.load %arg3[%c0_32, %c0_33] : memref<24x12xbf16, #tpu.memory_space<vmem>>, vector<24x12xbf16>
    %c0_34 = arith.constant 0 : index
    %c0_35 = arith.constant 0 : index
    %47 = vector.load %arg4[%c0_34, %c0_35] : memref<24x12xbf16, #tpu.memory_space<vmem>>, vector<24x12xbf16>
    %c0_36 = arith.constant 0 : index
    %c0_37 = arith.constant 0 : index
    %48 = vector.load %arg5[%c0_36, %c0_37] : memref<12x24xbf16, #tpu.memory_space<vmem>>, vector<12x24xbf16>
    %49 = arith.truncf %34 : vector<12x32xf32> to vector<12x32xbf16>
    %cst_38 = arith.constant dense<0.000000e+00> : vector<24x32xf32>
    %50 = tpu.matmul %46, %49, %cst_38 {dimension_numbers = #tpu.dot_dimension_numbers<[1], [0], [0], [1], [0, 0, 1, 1], [], []>} : vector<24x12xbf16>, vector<12x32xbf16>, vector<24x32xf32> -> vector<24x32xf32>
    %51 = arith.truncf %41 : vector<12x32xf32> to vector<12x32xbf16>
    %cst_39 = arith.constant dense<0.000000e+00> : vector<24x32xf32>
    %52 = tpu.matmul %47, %51, %cst_39 {dimension_numbers = #tpu.dot_dimension_numbers<[1], [0], [0], [1], [0, 0, 1, 1], [], []>} : vector<24x12xbf16>, vector<12x32xbf16>, vector<24x32xf32> -> vector<24x32xf32>
    %53 = arith.addf %52, %50 : vector<24x32xf32>
    %54 = arith.addf %53, %45 : vector<24x32xf32>
    %cst_40 = arith.constant 0.000000e+00 : f32
    %55 = vector.broadcast %cst_40 : f32 to vector<24x32xf32>
    %56 = arith.cmpf ogt, %54, %55 : vector<24x32xf32>
    %cst_41 = arith.constant 0.00999999977 : f32
    %57 = vector.broadcast %cst_41 : f32 to vector<24x32xf32>
    %58 = arith.mulf %57, %54 : vector<24x32xf32>
    %59 = arith.select %56, %54, %58 : vector<24x32xi1>, vector<24x32xf32>
    %c0_42 = arith.constant 0 : index
    %c0_43 = arith.constant 0 : index
    %c0_44 = arith.constant 0 : index
    %60 = vector.load %arg13[%c0_42, %c0_43, %c0_44] : memref<1x32x1xf32, #tpu.memory_space<vmem>>, vector<1x32x1xf32>
    %61 = vector.shape_cast %60 : vector<1x32x1xf32> to vector<32x1xf32>
    %cst_45 = arith.constant dense<0.000000e+00> : vector<24x1xf32>
    %62 = tpu.matmul %59, %61, %cst_45 {dimension_numbers = #tpu.dot_dimension_numbers<[1], [0], [0], [1], [0, 0, 1, 1], [], []>} : vector<24x32xf32>, vector<32x1xf32>, vector<24x1xf32> -> vector<24x1xf32>
    %cst_46 = arith.constant 0.000000e+00 : bf16
    %63 = vector.broadcast %cst_46 : bf16 to vector<24x12xbf16>
    %64 = arith.cmpf ogt, %47, %63 : vector<24x12xbf16>
    %cst_47 = arith.constant -1.000000e+30 : f32
    %65 = vector.shape_cast %62 : vector<24x1xf32> to vector<24x1xf32>
    %66 = vector.broadcast %65 : vector<24x1xf32> to vector<24x12xf32>
    %67 = vector.broadcast %cst_47 : f32 to vector<24x12xf32>
    %68 = arith.select %64, %66, %67 : vector<24x12xi1>, vector<24x12xf32>
    %cst_48 = arith.constant dense<0xFF800000> : vector<12xf32>
    %69 = vector.multi_reduction <maximumf>, %68, %cst_48 [0] : vector<24x12xf32> to vector<12xf32>
    %70 = vector.shape_cast %69 : vector<12xf32> to vector<1x12xf32>
    %71 = arith.extf %47 : vector<24x12xbf16> to vector<24x12xf32>
    %72 = vector.broadcast %70 : vector<1x12xf32> to vector<24x12xf32>
    %73 = arith.mulf %71, %72 : vector<24x12xf32>
    %cst_49 = arith.constant dense<0.000000e+00> : vector<24xf32>
    %74 = vector.multi_reduction <add>, %73, %cst_49 [1] : vector<24x12xf32> to vector<24xf32>
    %75 = vector.shape_cast %74 : vector<24xf32> to vector<24x1xf32>
    %76 = arith.subf %62, %75 : vector<24x1xf32>
    %77 = math.exp %76 : vector<24x1xf32>
    %78 = vector.broadcast %77 : vector<24x1xf32> to vector<24x32xf32>
    %79 = arith.mulf %50, %78 : vector<24x32xf32>
    %80 = arith.truncf %79 : vector<24x32xf32> to vector<24x32xbf16>
    %cst_50 = arith.constant dense<0.000000e+00> : vector<12x32xf32>
    %81 = tpu.matmul %48, %80, %cst_50 {dimension_numbers = #tpu.dot_dimension_numbers<[1], [0], [0], [1], [0, 0, 1, 1], [], []>} : vector<12x24xbf16>, vector<24x32xbf16>, vector<12x32xf32> -> vector<12x32xf32>
    %82 = arith.truncf %77 : vector<24x1xf32> to vector<24x1xbf16>
    %cst_51 = arith.constant dense<0.000000e+00> : vector<12x1xf32>
    %83 = tpu.matmul %48, %82, %cst_51 {dimension_numbers = #tpu.dot_dimension_numbers<[1], [0], [0], [1], [0, 0, 1, 1], [], []>} : vector<12x24xbf16>, vector<24x1xbf16>, vector<12x1xf32> -> vector<12x1xf32>
    %cst_52 = arith.constant 0.000000e+00 : f32
    %84 = vector.broadcast %cst_52 : f32 to vector<12x1xf32>
    %85 = arith.cmpf ogt, %83, %84 : vector<12x1xf32>
    %cst_53 = arith.constant 1.000000e+00 : f32
    %86 = vector.broadcast %cst_53 : f32 to vector<12x1xf32>
    %87 = arith.select %85, %83, %86 : vector<12x1xi1>, vector<12x1xf32>
    %88 = tpu.reciprocal %87 {approx = true} : vector<12x1xf32> -> vector<12x1xf32>
    %89 = vector.broadcast %88 : vector<12x1xf32> to vector<12x32xf32>
    %90 = arith.mulf %81, %89 : vector<12x32xf32>
    %c0_54 = arith.constant 0 : index
    %c0_55 = arith.constant 0 : index
    %c0_56 = arith.constant 0 : index
    %91 = vector.load %arg14[%c0_54, %c0_55, %c0_56] : memref<1x1x32xf32, #tpu.memory_space<vmem>>, vector<1x1x32xf32>
    %92 = vector.shape_cast %91 : vector<1x1x32xf32> to vector<1x32xf32>
    %93 = vector.broadcast %92 : vector<1x32xf32> to vector<12x32xf32>
    %94 = arith.addf %90, %93 : vector<12x32xf32>
    %c0_57 = arith.constant 0 : index
    %c0_58 = arith.constant 0 : index
    %c0_59 = arith.constant 0 : index
    %95 = vector.load %arg15[%c0_57, %c0_58, %c0_59] : memref<1x32x32xf32, #tpu.memory_space<vmem>>, vector<1x32x32xf32>
    %96 = vector.shape_cast %95 : vector<1x32x32xf32> to vector<32x32xf32>
    %cst_60 = arith.constant dense<0.000000e+00> : vector<12x32xf32>
    %97 = tpu.matmul %27, %96, %cst_60 {dimension_numbers = #tpu.dot_dimension_numbers<[1], [0], [0], [1], [0, 0, 1, 1], [], []>} : vector<12x32xf32>, vector<32x32xf32>, vector<12x32xf32> -> vector<12x32xf32>
    %c0_61 = arith.constant 0 : index
    %c0_62 = arith.constant 0 : index
    %c0_63 = arith.constant 0 : index
    %98 = vector.load %arg17[%c0_61, %c0_62, %c0_63] : memref<1x32x32xf32, #tpu.memory_space<vmem>>, vector<1x32x32xf32>
    %99 = vector.shape_cast %98 : vector<1x32x32xf32> to vector<32x32xf32>
    %cst_64 = arith.constant dense<0.000000e+00> : vector<12x32xf32>
    %100 = tpu.matmul %94, %99, %cst_64 {dimension_numbers = #tpu.dot_dimension_numbers<[1], [0], [0], [1], [0, 0, 1, 1], [], []>} : vector<12x32xf32>, vector<32x32xf32>, vector<12x32xf32> -> vector<12x32xf32>
    %101 = arith.addf %97, %100 : vector<12x32xf32>
    %c0_65 = arith.constant 0 : index
    %c0_66 = arith.constant 0 : index
    %c0_67 = arith.constant 0 : index
    %102 = vector.load %arg19[%c0_65, %c0_66, %c0_67] : memref<1x1x32xf32, #tpu.memory_space<vmem>>, vector<1x1x32xf32>
    %103 = vector.shape_cast %102 : vector<1x1x32xf32> to vector<1x32xf32>
    %104 = vector.broadcast %103 : vector<1x32xf32> to vector<12x32xf32>
    %105 = arith.addf %101, %104 : vector<12x32xf32>
    %c0_68 = arith.constant 0 : index
    %c0_69 = arith.constant 0 : index
    %c0_70 = arith.constant 0 : index
    %106 = vector.load %arg16[%c0_68, %c0_69, %c0_70] : memref<1x32x32xf32, #tpu.memory_space<vmem>>, vector<1x32x32xf32>
    %107 = vector.shape_cast %106 : vector<1x32x32xf32> to vector<32x32xf32>
    %cst_71 = arith.constant dense<0.000000e+00> : vector<12x32xf32>
    %108 = tpu.matmul %27, %107, %cst_71 {dimension_numbers = #tpu.dot_dimension_numbers<[1], [0], [0], [1], [0, 0, 1, 1], [], []>} : vector<12x32xf32>, vector<32x32xf32>, vector<12x32xf32> -> vector<12x32xf32>
    %c0_72 = arith.constant 0 : index
    %c0_73 = arith.constant 0 : index
    %c0_74 = arith.constant 0 : index
    %109 = vector.load %arg18[%c0_72, %c0_73, %c0_74] : memref<1x32x32xf32, #tpu.memory_space<vmem>>, vector<1x32x32xf32>
    %110 = vector.shape_cast %109 : vector<1x32x32xf32> to vector<32x32xf32>
    %cst_75 = arith.constant dense<0.000000e+00> : vector<12x32xf32>
    %111 = tpu.matmul %94, %110, %cst_75 {dimension_numbers = #tpu.dot_dimension_numbers<[1], [0], [0], [1], [0, 0, 1, 1], [], []>} : vector<12x32xf32>, vector<32x32xf32>, vector<12x32xf32> -> vector<12x32xf32>
    %112 = arith.addf %108, %111 : vector<12x32xf32>
    %c0_76 = arith.constant 0 : index
    %c0_77 = arith.constant 0 : index
    %c0_78 = arith.constant 0 : index
    %113 = vector.load %arg20[%c0_76, %c0_77, %c0_78] : memref<1x1x32xf32, #tpu.memory_space<vmem>>, vector<1x1x32xf32>
    %114 = vector.shape_cast %113 : vector<1x1x32xf32> to vector<1x32xf32>
    %115 = vector.broadcast %114 : vector<1x32xf32> to vector<12x32xf32>
    %116 = arith.addf %112, %115 : vector<12x32xf32>
    %cst_79 = arith.constant 0.000000e+00 : f32
    %117 = vector.broadcast %cst_79 : f32 to vector<12x32xf32>
    %118 = arith.cmpf ogt, %116, %117 : vector<12x32xf32>
    %119 = math.exp %116 : vector<12x32xf32>
    %cst_80 = arith.constant 1.000000e+00 : f32
    %120 = vector.broadcast %cst_80 : f32 to vector<12x32xf32>
    %121 = arith.subf %119, %120 : vector<12x32xf32>
    %122 = arith.select %118, %116, %121 : vector<12x32xi1>, vector<12x32xf32>
    %123 = arith.mulf %105, %122 : vector<12x32xf32>
    %c0_81 = arith.constant 0 : index
    %c0_82 = arith.constant 0 : index
    %124 = vector.load %arg21[%c0_81, %c0_82] : memref<12x32xf32, #tpu.memory_space<vmem>>, vector<12x32xf32>
    tpu.vector_store %arg21[%c0_81, %c0_82], %123 {strides = array<i32>} : memref<12x32xf32, #tpu.memory_space<vmem>>, vector<12x32xf32>,
    return
  }
  func.func @transform_0(%arg0: i32) -> (i32, i32) {
    %c0_i32 = arith.constant 0 : i32
    %c0_i32_0 = arith.constant 0 : i32
    %c0_i32_1 = arith.constant 0 : i32
    return %c0_i32, %c0_i32_0 : i32, i32
  }
  func.func @transform_1(%arg0: i32) -> (i32, i32) {
    %c0_i32 = arith.constant 0 : i32
    %c0_i32_0 = arith.constant 0 : i32
    %c0_i32_1 = arith.constant 0 : i32
    return %c0_i32, %c0_i32_0 : i32, i32
  }
  func.func @transform_2(%arg0: i32) -> (i32, i32) {
    %c0_i32 = arith.constant 0 : i32
    %c0_i32_0 = arith.constant 0 : i32
    %c0_i32_1 = arith.constant 0 : i32
    return %c0_i32, %c0_i32_0 : i32, i32
  }
  func.func @transform_3(%arg0: i32) -> (i32, i32) {
    %c0_i32 = arith.constant 0 : i32
    %c0_i32_0 = arith.constant 0 : i32
    %c0_i32_1 = arith.constant 0 : i32
    return %c0_i32, %c0_i32_0 : i32, i32
  }
  func.func @transform_4(%arg0: i32) -> (i32, i32) {
    %c0_i32 = arith.constant 0 : i32
    %c0_i32_0 = arith.constant 0 : i32
    %c0_i32_1 = arith.constant 0 : i32
    return %c0_i32, %c0_i32_0 : i32, i32
  }
  func.func @transform_5(%arg0: i32) -> (i32, i32, i32) {
    %c0_i32 = arith.constant 0 : i32
    %c0_i32_0 = arith.constant 0 : i32
    %c0_i32_1 = arith.constant 0 : i32
    return %arg0, %c0_i32, %c0_i32_0 : i32, i32, i32
  }
  func.func @transform_6(%arg0: i32) -> (i32, i32, i32) {
    %c0_i32 = arith.constant 0 : i32
    %c0_i32_0 = arith.constant 0 : i32
    %c0_i32_1 = arith.constant 0 : i32
    return %arg0, %c0_i32, %c0_i32_0 : i32, i32, i32
  }
  func.func @transform_7(%arg0: i32) -> (i32, i32, i32) {
    %c0_i32 = arith.constant 0 : i32
    %c0_i32_0 = arith.constant 0 : i32
    %c0_i32_1 = arith.constant 0 : i32
    return %arg0, %c0_i32, %c0_i32_0 : i32, i32, i32
  }
  func.func @transform_8(%arg0: i32) -> (i32, i32, i32) {
    %c0_i32 = arith.constant 0 : i32
    %c0_i32_0 = arith.constant 0 : i32
    %c0_i32_1 = arith.constant 0 : i32
    return %arg0, %c0_i32, %c0_i32_0 : i32, i32, i32
  }
  func.func @transform_9(%arg0: i32) -> (i32, i32, i32) {
    %c0_i32 = arith.constant 0 : i32
    %c0_i32_0 = arith.constant 0 : i32
    %c0_i32_1 = arith.constant 0 : i32
    return %arg0, %c0_i32, %c0_i32_0 : i32, i32, i32
  }
  func.func @transform_10(%arg0: i32) -> (i32, i32, i32) {
    %c0_i32 = arith.constant 0 : i32
    %c0_i32_0 = arith.constant 0 : i32
    %c0_i32_1 = arith.constant 0 : i32
    return %arg0, %c0_i32, %c0_i32_0 : i32, i32, i32
  }
  func.func @transform_11(%arg0: i32) -> (i32, i32, i32) {
    %c0_i32 = arith.constant 0 : i32
    %c0_i32_0 = arith.constant 0 : i32
    %c0_i32_1 = arith.constant 0 : i32
    return %arg0, %c0_i32, %c0_i32_0 : i32, i32, i32
  }
  func.func @transform_12(%arg0: i32) -> (i32, i32, i32) {
    %c0_i32 = arith.constant 0 : i32
    %c0_i32_0 = arith.constant 0 : i32
    %c0_i32_1 = arith.constant 0 : i32
    return %arg0, %c0_i32, %c0_i32_0 : i32, i32, i32
  }
  func.func @transform_13(%arg0: i32) -> (i32, i32, i32) {
    %c0_i32 = arith.constant 0 : i32
    %c0_i32_0 = arith.constant 0 : i32
    %c0_i32_1 = arith.constant 0 : i32
    return %arg0, %c0_i32, %c0_i32_0 : i32, i32, i32
  }
  func.func @transform_14(%arg0: i32) -> (i32, i32, i32) {
    %c0_i32 = arith.constant 0 : i32
    %c0_i32_0 = arith.constant 0 : i32
    %c0_i32_1 = arith.constant 0 : i32
    return %arg0, %c0_i32, %c0_i32_0 : i32, i32, i32
  }
  func.func @transform_15(%arg0: i32) -> (i32, i32, i32) {
    %c0_i32 = arith.constant 0 : i32
    %c0_i32_0 = arith.constant 0 : i32
    %c0_i32_1 = arith.constant 0 : i32
    return %arg0, %c0_i32, %c0_i32_0 : i32, i32, i32
  }
  func.func @transform_16(%arg0: i32) -> (i32, i32, i32) {
    %c0_i32 = arith.constant 0 : i32
    %c0_i32_0 = arith.constant 0 : i32
    %c0_i32_1 = arith.constant 0 : i32
    return %arg0, %c0_i32, %c0_i32_0 : i32, i32, i32
  }
  func.func @transform_17(%arg0: i32) -> (i32, i32, i32) {
    %c0_i32 = arith.constant 0 : i32
    %c0_i32_0 = arith.constant 0 : i32
    %c0_i32_1 = arith.constant 0 : i32
    return %arg0, %c0_i32, %c0_i32_0 : i32, i32, i32
  }
  func.func @transform_18(%arg0: i32) -> (i32, i32, i32) {
    %c0_i32 = arith.constant 0 : i32
    %c0_i32_0 = arith.constant 0 : i32
    %c0_i32_1 = arith.constant 0 : i32
    return %arg0, %c0_i32, %c0_i32_0 : i32, i32, i32
  }
  func.func @transform_19(%arg0: i32) -> (i32, i32, i32) {
    %c0_i32 = arith.constant 0 : i32
    %c0_i32_0 = arith.constant 0 : i32
    %c0_i32_1 = arith.constant 0 : i32
    return %arg0, %c0_i32, %c0_i32_0 : i32, i32, i32
  }
  func.func @transform_20(%arg0: i32) -> (i32, i32) {
    %c0_i32 = arith.constant 0 : i32
    %c0_i32_0 = arith.constant 0 : i32
    %c0_i32_1 = arith.constant 0 : i32
    return %c0_i32, %c0_i32_0 : i32, i32
  }
}

module attributes {stable_mosaic.version = 11 : i64} {
  func.func @_global_head_kernel(%arg0: memref<12x32xf32, #tpu.memory_space<vmem>>, %arg1: memref<12x2xbf16, #tpu.memory_space<vmem>>, %arg2: memref<2x12xbf16, #tpu.memory_space<vmem>>, %arg3: memref<32x32xf32, #tpu.memory_space<vmem>>, %arg4: memref<1x32xf32, #tpu.memory_space<vmem>>, %arg5: memref<32x32xf32, #tpu.memory_space<vmem>>, %arg6: memref<1x32xf32, #tpu.memory_space<vmem>>, %arg7: memref<32x1xf32, #tpu.memory_space<vmem>>, %arg8: memref<1x32xf32, #tpu.memory_space<vmem>>, %arg9: memref<32x32xf32, #tpu.memory_space<vmem>>, %arg10: memref<32x32xf32, #tpu.memory_space<vmem>>, %arg11: memref<32x32xf32, #tpu.memory_space<vmem>>, %arg12: memref<32x32xf32, #tpu.memory_space<vmem>>, %arg13: memref<1x32xf32, #tpu.memory_space<vmem>>, %arg14: memref<1x32xf32, #tpu.memory_space<vmem>>, %arg15: memref<1x32xf32, #tpu.memory_space<vmem>>, %arg16: memref<1x32xf32, #tpu.memory_space<vmem>>, %arg17: memref<32x32xf32, #tpu.memory_space<vmem>>, %arg18: memref<1x32xf32, #tpu.memory_space<vmem>>, %arg19: memref<32x32xf32, #tpu.memory_space<vmem>>, %arg20: memref<1x32xf32, #tpu.memory_space<vmem>>, %arg21: memref<32x1xf32, #tpu.memory_space<vmem>>, %arg22: memref<1x1xf32, #tpu.memory_space<vmem>>, %arg23: memref<2x1xf32, #tpu.memory_space<vmem>>) attributes {dimension_semantics = [], scalar_prefetch = 0 : i64, scratch_operands = 0 : i64, tpu.core_type = #tpu.core_type<tc>} {
    %c0 = arith.constant 0 : index
    %c0_0 = arith.constant 0 : index
    %0 = vector.load %arg0[%c0, %c0_0] : memref<12x32xf32, #tpu.memory_space<vmem>>, vector<12x32xf32>
    %c0_1 = arith.constant 0 : index
    %c0_2 = arith.constant 0 : index
    %1 = vector.load %arg1[%c0_1, %c0_2] : memref<12x2xbf16, #tpu.memory_space<vmem>>, vector<12x2xbf16>
    %c0_3 = arith.constant 0 : index
    %c0_4 = arith.constant 0 : index
    %2 = vector.load %arg2[%c0_3, %c0_4] : memref<2x12xbf16, #tpu.memory_space<vmem>>, vector<2x12xbf16>
    %3 = arith.truncf %0 : vector<12x32xf32> to vector<12x32xbf16>
    %cst = arith.constant dense<0.000000e+00> : vector<2x32xf32>
    %4 = tpu.matmul %2, %3, %cst {dimension_numbers = #tpu.dot_dimension_numbers<[1], [0], [0], [1], [0, 0, 1, 1], [], []>} : vector<2x12xbf16>, vector<12x32xbf16>, vector<2x32xf32> -> vector<2x32xf32>
    %cst_5 = arith.constant 0.000000e+00 : f32
    %5 = vector.broadcast %cst_5 : f32 to vector<2x32xf32>
    %6 = arith.maximumf %4, %5 : vector<2x32xf32>
    %c0_6 = arith.constant 0 : index
    %c0_7 = arith.constant 0 : index
    %7 = vector.load %arg3[%c0_6, %c0_7] : memref<32x32xf32, #tpu.memory_space<vmem>>, vector<32x32xf32>
    %cst_8 = arith.constant dense<0.000000e+00> : vector<12x32xf32>
    %8 = tpu.matmul %0, %7, %cst_8 {dimension_numbers = #tpu.dot_dimension_numbers<[1], [0], [0], [1], [0, 0, 1, 1], [], []>} : vector<12x32xf32>, vector<32x32xf32>, vector<12x32xf32> -> vector<12x32xf32>
    %c0_9 = arith.constant 0 : index
    %c0_10 = arith.constant 0 : index
    %9 = vector.load %arg4[%c0_9, %c0_10] : memref<1x32xf32, #tpu.memory_space<vmem>>, vector<1x32xf32>
    %10 = vector.broadcast %9 : vector<1x32xf32> to vector<12x32xf32>
    %11 = arith.addf %8, %10 : vector<12x32xf32>
    %c0_11 = arith.constant 0 : index
    %c0_12 = arith.constant 0 : index
    %12 = vector.load %arg5[%c0_11, %c0_12] : memref<32x32xf32, #tpu.memory_space<vmem>>, vector<32x32xf32>
    %cst_13 = arith.constant dense<0.000000e+00> : vector<2x32xf32>
    %13 = tpu.matmul %6, %12, %cst_13 {dimension_numbers = #tpu.dot_dimension_numbers<[1], [0], [0], [1], [0, 0, 1, 1], [], []>} : vector<2x32xf32>, vector<32x32xf32>, vector<2x32xf32> -> vector<2x32xf32>
    %c0_14 = arith.constant 0 : index
    %c0_15 = arith.constant 0 : index
    %14 = vector.load %arg6[%c0_14, %c0_15] : memref<1x32xf32, #tpu.memory_space<vmem>>, vector<1x32xf32>
    %15 = vector.broadcast %14 : vector<1x32xf32> to vector<2x32xf32>
    %16 = arith.addf %13, %15 : vector<2x32xf32>
    %17 = arith.truncf %16 : vector<2x32xf32> to vector<2x32xbf16>
    %cst_16 = arith.constant dense<0.000000e+00> : vector<12x32xf32>
    %18 = tpu.matmul %1, %17, %cst_16 {dimension_numbers = #tpu.dot_dimension_numbers<[1], [0], [0], [1], [0, 0, 1, 1], [], []>} : vector<12x2xbf16>, vector<2x32xbf16>, vector<12x32xf32> -> vector<12x32xf32>
    %19 = arith.addf %18, %11 : vector<12x32xf32>
    %cst_17 = arith.constant 0.000000e+00 : f32
    %20 = vector.broadcast %cst_17 : f32 to vector<12x32xf32>
    %21 = arith.cmpf ogt, %19, %20 : vector<12x32xf32>
    %cst_18 = arith.constant 0.00999999977 : f32
    %22 = vector.broadcast %cst_18 : f32 to vector<12x32xf32>
    %23 = arith.mulf %22, %19 : vector<12x32xf32>
    %24 = arith.select %21, %19, %23 : vector<12x32xi1>, vector<12x32xf32>
    %c0_19 = arith.constant 0 : index
    %c0_20 = arith.constant 0 : index
    %25 = vector.load %arg7[%c0_19, %c0_20] : memref<32x1xf32, #tpu.memory_space<vmem>>, vector<32x1xf32>
    %cst_21 = arith.constant dense<0.000000e+00> : vector<12x1xf32>
    %26 = tpu.matmul %24, %25, %cst_21 {dimension_numbers = #tpu.dot_dimension_numbers<[1], [0], [0], [1], [0, 0, 1, 1], [], []>} : vector<12x32xf32>, vector<32x1xf32>, vector<12x1xf32> -> vector<12x1xf32>
    %cst_22 = arith.constant 0.000000e+00 : bf16
    %27 = vector.broadcast %cst_22 : bf16 to vector<12x2xbf16>
    %28 = arith.cmpf ogt, %1, %27 : vector<12x2xbf16>
    %cst_23 = arith.constant -1.000000e+30 : f32
    %29 = vector.shape_cast %26 : vector<12x1xf32> to vector<12x1xf32>
    %30 = vector.broadcast %29 : vector<12x1xf32> to vector<12x2xf32>
    %31 = vector.broadcast %cst_23 : f32 to vector<12x2xf32>
    %32 = arith.select %28, %30, %31 : vector<12x2xi1>, vector<12x2xf32>
    %cst_24 = arith.constant dense<0xFF800000> : vector<2xf32>
    %33 = vector.multi_reduction <maximumf>, %32, %cst_24 [0] : vector<12x2xf32> to vector<2xf32>
    %34 = vector.shape_cast %33 : vector<2xf32> to vector<1x2xf32>
    %35 = arith.extf %1 : vector<12x2xbf16> to vector<12x2xf32>
    %36 = vector.broadcast %34 : vector<1x2xf32> to vector<12x2xf32>
    %37 = arith.mulf %35, %36 : vector<12x2xf32>
    %cst_25 = arith.constant dense<0.000000e+00> : vector<12xf32>
    %38 = vector.multi_reduction <add>, %37, %cst_25 [1] : vector<12x2xf32> to vector<12xf32>
    %39 = vector.shape_cast %38 : vector<12xf32> to vector<12x1xf32>
    %40 = arith.subf %26, %39 : vector<12x1xf32>
    %41 = math.exp %40 : vector<12x1xf32>
    %42 = vector.broadcast %41 : vector<12x1xf32> to vector<12x32xf32>
    %43 = arith.mulf %11, %42 : vector<12x32xf32>
    %44 = arith.truncf %43 : vector<12x32xf32> to vector<12x32xbf16>
    %cst_26 = arith.constant dense<0.000000e+00> : vector<2x32xf32>
    %45 = tpu.matmul %2, %44, %cst_26 {dimension_numbers = #tpu.dot_dimension_numbers<[1], [0], [0], [1], [0, 0, 1, 1], [], []>} : vector<2x12xbf16>, vector<12x32xbf16>, vector<2x32xf32> -> vector<2x32xf32>
    %46 = arith.truncf %41 : vector<12x1xf32> to vector<12x1xbf16>
    %cst_27 = arith.constant dense<0.000000e+00> : vector<2x1xf32>
    %47 = tpu.matmul %2, %46, %cst_27 {dimension_numbers = #tpu.dot_dimension_numbers<[1], [0], [0], [1], [0, 0, 1, 1], [], []>} : vector<2x12xbf16>, vector<12x1xbf16>, vector<2x1xf32> -> vector<2x1xf32>
    %cst_28 = arith.constant 0.000000e+00 : f32
    %48 = vector.broadcast %cst_28 : f32 to vector<2x1xf32>
    %49 = arith.cmpf ogt, %47, %48 : vector<2x1xf32>
    %cst_29 = arith.constant 1.000000e+00 : f32
    %50 = vector.broadcast %cst_29 : f32 to vector<2x1xf32>
    %51 = arith.select %49, %47, %50 : vector<2x1xi1>, vector<2x1xf32>
    %52 = tpu.reciprocal %51 {approx = true} : vector<2x1xf32> -> vector<2x1xf32>
    %53 = vector.broadcast %52 : vector<2x1xf32> to vector<2x32xf32>
    %54 = arith.mulf %45, %53 : vector<2x32xf32>
    %c0_30 = arith.constant 0 : index
    %c0_31 = arith.constant 0 : index
    %55 = vector.load %arg8[%c0_30, %c0_31] : memref<1x32xf32, #tpu.memory_space<vmem>>, vector<1x32xf32>
    %56 = vector.broadcast %55 : vector<1x32xf32> to vector<2x32xf32>
    %57 = arith.addf %54, %56 : vector<2x32xf32>
    %c0_32 = arith.constant 0 : index
    %c0_33 = arith.constant 0 : index
    %58 = vector.load %arg9[%c0_32, %c0_33] : memref<32x32xf32, #tpu.memory_space<vmem>>, vector<32x32xf32>
    %cst_34 = arith.constant dense<0.000000e+00> : vector<2x32xf32>
    %59 = tpu.matmul %6, %58, %cst_34 {dimension_numbers = #tpu.dot_dimension_numbers<[1], [0], [0], [1], [0, 0, 1, 1], [], []>} : vector<2x32xf32>, vector<32x32xf32>, vector<2x32xf32> -> vector<2x32xf32>
    %c0_35 = arith.constant 0 : index
    %c0_36 = arith.constant 0 : index
    %60 = vector.load %arg11[%c0_35, %c0_36] : memref<32x32xf32, #tpu.memory_space<vmem>>, vector<32x32xf32>
    %cst_37 = arith.constant dense<0.000000e+00> : vector<2x32xf32>
    %61 = tpu.matmul %57, %60, %cst_37 {dimension_numbers = #tpu.dot_dimension_numbers<[1], [0], [0], [1], [0, 0, 1, 1], [], []>} : vector<2x32xf32>, vector<32x32xf32>, vector<2x32xf32> -> vector<2x32xf32>
    %62 = arith.addf %59, %61 : vector<2x32xf32>
    %c0_38 = arith.constant 0 : index
    %c0_39 = arith.constant 0 : index
    %63 = vector.load %arg13[%c0_38, %c0_39] : memref<1x32xf32, #tpu.memory_space<vmem>>, vector<1x32xf32>
    %64 = vector.broadcast %63 : vector<1x32xf32> to vector<2x32xf32>
    %65 = arith.addf %62, %64 : vector<2x32xf32>
    %c0_40 = arith.constant 0 : index
    %c0_41 = arith.constant 0 : index
    %66 = vector.load %arg10[%c0_40, %c0_41] : memref<32x32xf32, #tpu.memory_space<vmem>>, vector<32x32xf32>
    %cst_42 = arith.constant dense<0.000000e+00> : vector<2x32xf32>
    %67 = tpu.matmul %6, %66, %cst_42 {dimension_numbers = #tpu.dot_dimension_numbers<[1], [0], [0], [1], [0, 0, 1, 1], [], []>} : vector<2x32xf32>, vector<32x32xf32>, vector<2x32xf32> -> vector<2x32xf32>
    %c0_43 = arith.constant 0 : index
    %c0_44 = arith.constant 0 : index
    %68 = vector.load %arg12[%c0_43, %c0_44] : memref<32x32xf32, #tpu.memory_space<vmem>>, vector<32x32xf32>
    %cst_45 = arith.constant dense<0.000000e+00> : vector<2x32xf32>
    %69 = tpu.matmul %57, %68, %cst_45 {dimension_numbers = #tpu.dot_dimension_numbers<[1], [0], [0], [1], [0, 0, 1, 1], [], []>} : vector<2x32xf32>, vector<32x32xf32>, vector<2x32xf32> -> vector<2x32xf32>
    %70 = arith.addf %67, %69 : vector<2x32xf32>
    %c0_46 = arith.constant 0 : index
    %c0_47 = arith.constant 0 : index
    %71 = vector.load %arg14[%c0_46, %c0_47] : memref<1x32xf32, #tpu.memory_space<vmem>>, vector<1x32xf32>
    %72 = vector.broadcast %71 : vector<1x32xf32> to vector<2x32xf32>
    %73 = arith.addf %70, %72 : vector<2x32xf32>
    %cst_48 = arith.constant 0.000000e+00 : f32
    %74 = vector.broadcast %cst_48 : f32 to vector<2x32xf32>
    %75 = arith.cmpf ogt, %73, %74 : vector<2x32xf32>
    %76 = math.exp %73 : vector<2x32xf32>
    %cst_49 = arith.constant 1.000000e+00 : f32
    %77 = vector.broadcast %cst_49 : f32 to vector<2x32xf32>
    %78 = arith.subf %76, %77 : vector<2x32xf32>
    %79 = arith.select %75, %73, %78 : vector<2x32xi1>, vector<2x32xf32>
    %80 = arith.mulf %65, %79 : vector<2x32xf32>
    %c0_50 = arith.constant 0 : index
    %c0_51 = arith.constant 0 : index
    %81 = vector.load %arg15[%c0_50, %c0_51] : memref<1x32xf32, #tpu.memory_space<vmem>>, vector<1x32xf32>
    %c0_52 = arith.constant 0 : index
    %c0_53 = arith.constant 0 : index
    %82 = vector.load %arg16[%c0_52, %c0_53] : memref<1x32xf32, #tpu.memory_space<vmem>>, vector<1x32xf32>
    %cst_54 = arith.constant dense<0.000000e+00> : vector<2xf32>
    %83 = vector.multi_reduction <add>, %80, %cst_54 [1] : vector<2x32xf32> to vector<2xf32>
    %84 = vector.shape_cast %83 : vector<2xf32> to vector<2x1xf32>
    %cst_55 = arith.constant 3.200000e+01 : f32
    %85 = vector.broadcast %cst_55 : f32 to vector<2x1xf32>
    %86 = arith.divf %84, %85 : vector<2x1xf32>
    %87 = vector.broadcast %86 : vector<2x1xf32> to vector<2x32xf32>
    %88 = arith.subf %80, %87 : vector<2x32xf32>
    %89 = arith.mulf %88, %88 : vector<2x32xf32>
    %cst_56 = arith.constant dense<0.000000e+00> : vector<2xf32>
    %90 = vector.multi_reduction <add>, %89, %cst_56 [1] : vector<2x32xf32> to vector<2xf32>
    %91 = vector.shape_cast %90 : vector<2xf32> to vector<2x1xf32>
    %cst_57 = arith.constant 3.200000e+01 : f32
    %92 = vector.broadcast %cst_57 : f32 to vector<2x1xf32>
    %93 = arith.divf %91, %92 : vector<2x1xf32>
    %cst_58 = arith.constant 9.99999974E-6 : f32
    %94 = vector.broadcast %cst_58 : f32 to vector<2x1xf32>
    %95 = arith.addf %93, %94 : vector<2x1xf32>
    %96 = math.rsqrt %95 : vector<2x1xf32>
    %97 = vector.broadcast %96 : vector<2x1xf32> to vector<2x32xf32>
    %98 = arith.mulf %88, %97 : vector<2x32xf32>
    %99 = vector.broadcast %81 : vector<1x32xf32> to vector<2x32xf32>
    %100 = arith.mulf %98, %99 : vector<2x32xf32>
    %101 = vector.broadcast %82 : vector<1x32xf32> to vector<2x32xf32>
    %102 = arith.addf %100, %101 : vector<2x32xf32>
    %c0_59 = arith.constant 0 : index
    %c0_60 = arith.constant 0 : index
    %103 = vector.load %arg17[%c0_59, %c0_60] : memref<32x32xf32, #tpu.memory_space<vmem>>, vector<32x32xf32>
    %cst_61 = arith.constant dense<0.000000e+00> : vector<2x32xf32>
    %104 = tpu.matmul %102, %103, %cst_61 {dimension_numbers = #tpu.dot_dimension_numbers<[1], [0], [0], [1], [0, 0, 1, 1], [], []>} : vector<2x32xf32>, vector<32x32xf32>, vector<2x32xf32> -> vector<2x32xf32>
    %c0_62 = arith.constant 0 : index
    %c0_63 = arith.constant 0 : index
    %105 = vector.load %arg18[%c0_62, %c0_63] : memref<1x32xf32, #tpu.memory_space<vmem>>, vector<1x32xf32>
    %106 = vector.broadcast %105 : vector<1x32xf32> to vector<2x32xf32>
    %107 = arith.addf %104, %106 : vector<2x32xf32>
    %108 = arith.negf %107 : vector<2x32xf32>
    %109 = math.exp %108 : vector<2x32xf32>
    %cst_64 = arith.constant 1.000000e+00 : f32
    %110 = vector.broadcast %cst_64 : f32 to vector<2x32xf32>
    %111 = arith.addf %110, %109 : vector<2x32xf32>
    %112 = arith.divf %110, %111 : vector<2x32xf32>
    %113 = arith.mulf %107, %112 : vector<2x32xf32>
    %c0_65 = arith.constant 0 : index
    %c0_66 = arith.constant 0 : index
    %114 = vector.load %arg19[%c0_65, %c0_66] : memref<32x32xf32, #tpu.memory_space<vmem>>, vector<32x32xf32>
    %cst_67 = arith.constant dense<0.000000e+00> : vector<2x32xf32>
    %115 = tpu.matmul %113, %114, %cst_67 {dimension_numbers = #tpu.dot_dimension_numbers<[1], [0], [0], [1], [0, 0, 1, 1], [], []>} : vector<2x32xf32>, vector<32x32xf32>, vector<2x32xf32> -> vector<2x32xf32>
    %c0_68 = arith.constant 0 : index
    %c0_69 = arith.constant 0 : index
    %116 = vector.load %arg20[%c0_68, %c0_69] : memref<1x32xf32, #tpu.memory_space<vmem>>, vector<1x32xf32>
    %117 = vector.broadcast %116 : vector<1x32xf32> to vector<2x32xf32>
    %118 = arith.addf %115, %117 : vector<2x32xf32>
    %119 = arith.negf %118 : vector<2x32xf32>
    %120 = math.exp %119 : vector<2x32xf32>
    %cst_70 = arith.constant 1.000000e+00 : f32
    %121 = vector.broadcast %cst_70 : f32 to vector<2x32xf32>
    %122 = arith.addf %121, %120 : vector<2x32xf32>
    %123 = arith.divf %121, %122 : vector<2x32xf32>
    %124 = arith.mulf %118, %123 : vector<2x32xf32>
    %c0_71 = arith.constant 0 : index
    %c0_72 = arith.constant 0 : index
    %125 = vector.load %arg21[%c0_71, %c0_72] : memref<32x1xf32, #tpu.memory_space<vmem>>, vector<32x1xf32>
    %cst_73 = arith.constant dense<0.000000e+00> : vector<2x1xf32>
    %126 = tpu.matmul %124, %125, %cst_73 {dimension_numbers = #tpu.dot_dimension_numbers<[1], [0], [0], [1], [0, 0, 1, 1], [], []>} : vector<2x32xf32>, vector<32x1xf32>, vector<2x1xf32> -> vector<2x1xf32>
    %c0_74 = arith.constant 0 : index
    %c0_75 = arith.constant 0 : index
    %127 = vector.load %arg22[%c0_74, %c0_75] : memref<1x1xf32, #tpu.memory_space<vmem>>, vector<1x1xf32>
    %128 = vector.broadcast %127 : vector<1x1xf32> to vector<2x1xf32>
    %129 = arith.addf %126, %128 : vector<2x1xf32>
    %c0_76 = arith.constant 0 : index
    %c0_77 = arith.constant 0 : index
    %130 = vector.load %arg23[%c0_76, %c0_77] : memref<2x1xf32, #tpu.memory_space<vmem>>, vector<2x1xf32>
    tpu.vector_store %arg23[%c0_76, %c0_77], %129 {strides = array<i32>} : memref<2x1xf32, #tpu.memory_space<vmem>>, vector<2x1xf32>,
    return
  }
}

</mosaic_0001>

<bundles_post_ra>
// kernel: gatom_forward.3
= control target key start
LH: loop header
LB: loop body
LE: loop exit
PB: predicated region body
PF: predicated region fallthrough
CT: control target
= control target key end

     0   :  { %13 = vsyncpa [#allocation3], 0  ;;  %s487_s0 = inlined_call_operand.vmem [shape: f32[12,16], index: 0, kind: input, shape index: {}]   ;;  %s488_s1 = inlined_call_operand.vmem [shape: f32[24,8], index: 1, kind: input, shape index: {}]   ;;  %s489_s2 = inlined_call_operand.vmem [shape: f32[16,32], index: 2, kind: input, shape index: {}]   ;;  %s490_s3 = inlined_call_operand.hbm [shape: f32[1,32], index: 3, kind: input, shape index: {}]   ;;  %s491_s4 = inlined_call_operand.hbm [shape: f32[8,32], index: 4, kind: input, shape index: {}]   ;;  %s492_s5 = inlined_call_operand.vmem [shape: f32[1,32], index: 5, kind: input, shape index: {}]   ;;  %s493_s6 = inlined_call_operand.vmem [shape: f32[12,32], index: 6, kind: output, shape index: {0}]   ;;  %s494_s7 = inlined_call_operand.vmem [shape: f32[24,32], index: 7, kind: output, shape index: {1}]  }
   0x1   :  { %s26_s26 = sshll.u32 %s490_s3, 4  ;;  %s27_s26 = int_to_ptr.hbm [resolvable:$true] %s26_s26 }
   0x2   :  { %14 = vsyncpa [#allocation5], 0  ;;  %s341_s27 = smov [#allocation2]   ;;  %s37_s8 = sshll.u32 %s491_s4, 4  ;;  %s38_s8 = int_to_ptr.hbm [resolvable:$true] %s37_s8 }
   0x3   :  { %s28_s28 = sshll.u32 %s341_s27, 4  ;;  %s342_s9 = smov [#allocation4]   ;;  %s29_s28 = int_to_ptr.vmem [resolvable:$true] %s28_s28 }
   0x4   :  { %31 = dma.hbm_to_vmem [thread:$0]  %s27_s26, 16, %s29_s28, [#allocation3]  }
   0x5   :  { %s39_s10 = sshll.u32 %s342_s9, 4  ;;  %s40_s10 = int_to_ptr.vmem [resolvable:$true] %s39_s10 }
   0x6   :  { %42 = dma.hbm_to_vmem [thread:$0]  %s38_s8, 128, %s40_s10, [#allocation5]  }
   0x7   :  { %337 = dma.done.wait [#allocation3], 16  }
   0x8   :  { %338 = vsyncadd [#allocation3], 4294967280 }
   0x9   :  { %339 = dma.done.wait [#allocation5], 128  }
   0xa   :  { %340 = vsyncadd [#allocation5], 4294967168  ;;  %v56_v0 = vld [vmem:[%s489_s2 + $0x8] sm:$0xff]  ;;  %v135_v2 = vld [vmem:[%s488_s1] sm:$0xff]  ;;  %vm143_vm0 = vcmask 64512   ;;  %vm61_vm1 = vcmask 130048  }
   0xb   :  { %v138_v1 = vld [vmem:[#allocation4] sm:$0xff]  ;;  %82 = vmatpush.msra.mxu0 %v56_v0  ;;  %262 = vmatpush.msra.mxu3 %v56_v0  ;;  %v137_v7 = vld [vmem:[%s488_s1 + $0x10] sm:$0xff]  ;;  %v267_v8 = vld [vmem:[%s492_s5] ss:$0 sm:$0xff]  ;;  %vm131_vm8 = vcmask 261120  }
   0xc   :  { %v136_v3 = vld [vmem:[%s488_s1 + $0x8] sm:$0xff]  ;;  %v55_v4 = vld [vmem:[%s489_s2] sm:$0xff]  ;;  %168 = vmatpush.msra.mxu1 %v138_v1  ;;  %264 = vmatpush.msra.mxu2 %v138_v1 }
   0xd   :  { %v53_v5 = vld [vmem:[%s487_s0] sm:$0xff]  ;;  %v54_v6 = vld [vmem:[%s487_s0 + $0x8] sm:$0xf]  ;;  %256 = vmatmul.msk.f32.vlgmr.msra.gmra.mxu1 %vm143_vm0, %v135_v2  ;;  %257 = vmatmul.msk.f32.vlgmr.msra.gmra.mxu2 %vm143_vm0, %v136_v3 }
   0xe   :  { %83 = vmatpush.msra.mxu0 %v55_v4  ;;  %263 = vmatpush.msra.mxu3 %v55_v4  ;;  %v268_v9 = vld [vmem:[#allocation2] ss:$0 sm:$0xff] }
   0xf   :  { %252 = vmatmul.msk.f32.vlgmr.msra.gmra.mxu0 %vm61_vm1, %v53_v5  ;;  %253 = vmatmul.msk.f32.vlgmr.msra.gmra.mxu3 %vm61_vm1, %v54_v6 }
  0x15   :  { %258 = vmatmul.msk.f32.gmra.mxu2 %vm143_vm0, %v137_v7 }
  0x8a   :  { %v170_v10 = vpop.f32.mrf.mxu1 }
  0x8b   :  { %v416_v11 = vadd.f32 %v267_v8, %v170_v10 }
  0x8c   :  { %v85_v12 = vpop.f32.mrf.mxu0 }
  0x8d   :  { %v259_v13 = vmul.f32 -1.442695, %v416_v11  ;;  %v419_v14 = vadd.f32 %v268_v9, %v85_v12 }
  0x8f   :  { %269 = vpow2.f32 %v259_v13  ;;  %v254_v15 = vmul.f32 -1.442695, %v419_v14 }
  0x90   :  { %v173_v16 = vpop.f32.mrf.mxu2 }
  0x91   :  { %271 = vpow2.f32 %v254_v15  ;;  %v422_v17 = vadd.f32 %v267_v8, %v173_v16 }
  0x92   :  { %v88_v18 = vpop.f32.mrf.mxu3 }
  0x93   :  { %v260_v19 = vmul.f32 -1.442695, %v422_v17  ;;  %v425_v20 = vadd.f32 %v268_v9, %v88_v18 }
  0x95   :  { %v270_v21 = vpop.eup %269  ;;  %273 = vpow2.f32 %v260_v19  ;;  %v255_v22 = vmul.f32 -1.442695, %v425_v20 }
  0x96   :  { %v188_v23 = vadd.f32 1.0, %v270_v21 }
  0x97   :  { %v272_v24 = vpop.eup %271  ;;  %275 = vpow2.f32 %v255_v22 }
  0x98   :  { %277 = vrcp.f32 %v188_v23  ;;  %v176_v25 = vpop.f32.mrf.mxu2  ;;  %v97_v26 = vadd.f32 1.0, %v272_v24  ;;  %vm196_vm2 = vweird.f32 %v188_v23  ;;  %v202_v35 = vand.u32 2147483648, %v188_v23 }
  0x99   :  { %v428_v27 = vadd.f32 %v267_v8, %v176_v25  ;;  %v200_v38 = vand.u32 2147483647, %v188_v23 }
  0x9a   :  { %279 = vrcp.f32 %v97_v26  ;;  %v108_v41 = vand.u32 2147483647, %v97_v26  ;;  %v110_v42 = vand.u32 2147483648, %v97_v26  ;;  %v203_v45 = vor.u32 1.1754944e-38, %v202_v35 }
  0x9b   :  { %v274_v28 = vpop.eup %273  ;;  %v261_v30 = vmul.f32 -1.442695, %v428_v27  ;;  %vm104_vm5 = vweird.f32 %v97_v26  ;;  %vm201_vm7 = vcmp.eq.f32.partialorder %v200_v38, 8.507059e+37 }
  0x9c   :  { %v430_v29 = vadd.f32 1.0, %v274_v28  ;;  %vm449_vm10 = vcmp.eq.f32.partialorder %v108_v41, 8.507059e+37  ;;  %v111_v57 = vor.u32 1.1754944e-38, %v110_v42 }
  0x9d   :  { %v276_v31 = vpop.eup %275 }
  0x9e   :  { %v278_v32 = vpop.eup %277  ;;  %281 = vrcp.f32 %v430_v29  ;;  %v434_v34 = vadd.f32 1.0, %v276_v31  ;;  %v217_v51 = vand.u32 2147483648, %v430_v29  ;;  %v215_v61 = vand.u32 2147483647, %v430_v29 }
  0x9f   :  { %v192_v33 = vmul.f32 %v278_v32, %v188_v23  ;;  %283 = vpow2.f32 %v261_v30  ;;  %vm197_vm3 = vweird.f32 %v278_v32  ;;  %vm211_vm12 = vweird.f32 %v430_v29 }
  0xa0   :  { %v280_v36 = vpop.eup %279  ;;  %285 = vrcp.f32 %v434_v34  ;;  %vm437_vm4 = vmor %vm196_vm2, %vm197_vm3  ;;  %v218_v2 = vor.u32 1.1754944e-38, %v217_v51  ;;  %vm119_vm13 = vweird.f32 %v434_v34  ;;  %v125_v6 = vand.u32 2147483648, %v434_v34 }
  0xa1   :  { %v193_v37 = vsub.f32 1.0, %v192_v33  ;;  %v100_v39 = vmul.f32 %v280_v36, %v97_v26  ;;  %vm105_vm6 = vweird.f32 %v280_v36  ;;  %v123_v9 = vand.u32 2147483647, %v434_v34 }
  0xa2   :  { %vm445_vm9 = vmor %vm104_vm5, %vm105_vm6  ;;  %vm216_vm0 = vcmp.eq.f32.partialorder %v215_v61, 8.507059e+37  ;;  %v126_v16 = vor.u32 1.1754944e-38, %v125_v6  ;;  %vm133_vm3 = vcmask 257024  }
  0xa3   :  { %v194_v40 = vmul.f32 %v278_v32, %v193_v37  ;;  %v101_v46 = vsub.f32 1.0, %v100_v39  ;;  %vm124_vm2 = vcmp.eq.f32.partialorder %v123_v9, 8.507059e+37 }
  0xa4   :  { %v282_v43 = vpop.eup %281 }
  0xa5   :  { %v284_v47 = vpop.eup %283  ;;  %v195_v48 = vadd.f32 %v278_v32, %v194_v40  ;;  %v207_v49 = vmul.f32 %v282_v43, %v430_v29  ;;  %v102_v50 = vmul.f32 %v280_v36, %v101_v46  ;;  %vm212_vm11 = vweird.f32 %v282_v43 }
  0xa6   :  { %v190_v52 = vadd.f32 1.0, %v284_v47  ;;  %v286_v53 = vpop.eup %285  ;;  %vm213_vm14 = vmor %vm211_vm12, %vm212_vm11 }
  0xa7   :  { %v199_v54 = vsel %vm437_vm4, %v278_v32, %v195_v48  ;;  %v208_v58 = vsub.f32 1.0, %v207_v49  ;;  %v103_v60 = vadd.f32 %v280_v36, %v102_v50  ;;  %v115_v62 = vmul.f32 %v286_v53, %v434_v34 }
  0xa8   :  { %v204_v59 = vsel %vm201_vm7, %v203_v45, %v199_v54  ;;  %287 = vrcp.f32 %v190_v52  ;;  %vm120_vm15 = vweird.f32 %v286_v53  ;;  %v232_v23 = vand.u32 2147483648, %v190_v52 }
  0xa9   :  { %v236_v63 = vmul.f32 %v204_v59, %v416_v11  ;;  %v209_v0 = vmul.f32 %v282_v43, %v208_v58  ;;  %v107_v1 = vsel %vm445_vm9, %v280_v36, %v103_v60  ;;  %v116_v3 = vsub.f32 1.0, %v115_v62  ;;  %vm121_vm1 = vmor %vm119_vm13, %vm120_vm15 }
  0xaa   :  { %v112_v4 = vsel %vm449_vm10, %v111_v57, %v107_v1  ;;  %v230_v24 = vand.u32 2147483647, %v190_v52  ;;  %vm226_vm5 = vweird.f32 %v190_v52  ;;  %v233_v26 = vor.u32 1.1754944e-38, %v232_v23 }
  0xab   :  { %239 = vst.msk [vmem:[%s494_s7] sm:$0xff] %vm131_vm8, %v236_v63  ;;  %v210_v5 = vadd.f32 %v282_v43, %v209_v0  ;;  %v129_v7 = vmul.f32 %v112_v4, %v419_v14  ;;  %v117_v8 = vmul.f32 %v286_v53, %v116_v3 }
  0xac   :  { %vm231_vm7 = vcmp.eq.f32.partialorder %v230_v24, 8.507059e+37 }
  0xad   :  { %v214_v10 = vsel %vm213_vm14, %v282_v43, %v210_v5  ;;  %132 = vst.msk [vmem:[%s493_s6] sm:$0xff] %vm131_vm8, %v129_v7  ;;  %v118_v12 = vadd.f32 %v286_v53, %v117_v8 }
  0xae   :  { %v219_v11 = vsel %vm216_vm0, %v218_v2, %v214_v10  ;;  %v288_v13 = vpop.eup %287 }
  0xaf   :  { %v237_v15 = vmul.f32 %v219_v11, %v422_v17  ;;  %v122_v14 = vsel %vm121_vm1, %v286_v53, %v118_v12  ;;  %v222_v18 = vmul.f32 %v288_v13, %v190_v52  ;;  %vm227_vm4 = vweird.f32 %v288_v13 }
  0xb0   :  { %v127_v19 = vsel %vm124_vm2, %v126_v16, %v122_v14  ;;  %vm228_vm6 = vmor %vm226_vm5, %vm227_vm4 }
  0xb1   :  { %240 = vst.msk [vmem:[%s494_s7 + $0x8] sm:$0xff] %vm131_vm8, %v237_v15  ;;  %v130_v21 = vmul.f32 %v127_v19, %v425_v20  ;;  %v223_v22 = vsub.f32 1.0, %v222_v18 }
  0xb3   :  { %134 = vst.msk [vmem:[%s493_s6 + $0x8] sm:$0xf] %vm133_vm3, %v130_v21  ;;  %v224_v17 = vmul.f32 %v288_v13, %v223_v22 }
  0xb5   :  { %v225_v25 = vadd.f32 %v288_v13, %v224_v17 }
  0xb7   :  { %v229_v28 = vsel %vm228_vm6, %v288_v13, %v225_v25 }
  0xb8   :  { %v234_v29 = vsel %vm231_vm7, %v233_v26, %v229_v28 }
  0xb9   :  { %v238_v30 = vmul.f32 %v234_v29, %v428_v27 }
  0xbb   :  { %241 = vst.msk [vmem:[%s494_s7 + $0x10] sm:$0xff] %vm131_vm8, %v238_v30 }
  0xbc   :  { %250 = vsyncpa [#allocation3], 1 }
  0xbd   :  { %251 = vsyncpa [#allocation5], 1 }

// kernel: gatom_forward.5
= control target key start
LH: loop header
LB: loop body
LE: loop exit
PB: predicated region body
PF: predicated region fallthrough
CT: control target
= control target key end

     0   :  { %vm87_vm0 = vcmask 1045504   ;;  %vm83_vm1 = vcmask 97280   ;;  %vm113_vm2 = vcmask 261120   ;;  %vm184_vm3 = vcmask 1040384   ;;  %s1028_s0 = inlined_call_operand.vmem [shape: f32[12,32], index: 0, kind: input, shape index: {}]   ;;  %s1029_s5 = inlined_call_operand.vmem [shape: f32[32,32], index: 5, kind: input, shape index: {}]   ;;  %s1030_s2 = inlined_call_operand.vmem [shape: bf16[2,12], index: 2, kind: input, shape index: {}]   ;;  %s1031_s6 = inlined_call_operand.vmem [shape: f32[1,32], index: 6, kind: input, shape index: {}]   ;;  %s1032_s4 = inlined_call_operand.vmem [shape: f32[1,32], index: 4, kind: input, shape index: {}]   ;;  %s1033_s3 = inlined_call_operand.vmem [shape: f32[32,32], index: 3, kind: input, shape index: {}]   ;;  %s1034_s1 = inlined_call_operand.vmem [shape: bf16[12,2], index: 1, kind: input, shape index: {}]   ;;  %s1035_s7 = inlined_call_operand.vmem [shape: f32[32,1], index: 7, kind: input, shape index: {}]   ;;  %s1036_s10 = inlined_call_operand.vmem [shape: f32[32,32], index: 10, kind: input, shape index: {}]   ;;  %s1037_s8 = inlined_call_operand.vmem [shape: f32[1,32], index: 8, kind: input, shape index: {}]   ;;  %s1038_s11 = inlined_call_operand.vmem [shape: f32[32,32], index: 11, kind: input, shape index: {}]   ;;  %s1039_s12 = inlined_call_operand.vmem [shape: f32[32,32], index: 12, kind: input, shape index: {}]   ;;  %s1040_s9 = inlined_call_operand.vmem [shape: f32[32,32], index: 9, kind: input, shape index: {}]   ;;  %s1041_s14 = inlined_call_operand.vmem [shape: f32[1,32], index: 14, kind: input, shape index: {}]   ;;  %s1042_s13 = inlined_call_operand.vmem [shape: f32[1,32], index: 13, kind: input, shape index: {}]   ;;  %s1043_s15 = inlined_call_operand.vmem [shape: f32[1,32], index: 15, kind: input, shape index: {}]   ;;  %s1044_s16 = inlined_call_operand.vmem [shape: f32[1,32], index: 16, kind: input, shape index: {}]   ;;  %s1045_s18 = inlined_call_operand.vmem [shape: f32[1,32], index: 18, kind: input, shape index: {}]   ;;  %s1046_s17 = inlined_call_operand.vmem [shape: f32[32,32], index: 17, kind: input, shape index: {}]   ;;  %s1047_s20 = inlined_call_operand.vmem [shape: f32[1,32], index: 20, kind: input, shape index: {}]   ;;  %s1048_s19 = inlined_call_operand.vmem [shape: f32[32,32], index: 19, kind: input, shape index: {}]   ;;  %s1049_s21 = inlined_call_operand.vmem [shape: f32[32,1], index: 21, kind: input, shape index: {}]   ;;  %s1050_s22 = inlined_call_operand.<no memory space> [shape: f32[1,1], index: 22, kind: input, shape index: {}]   ;;  %s1051_s23 = inlined_call_operand.vmem [shape: f32[2,1], index: 23, kind: output, shape index: {}]  }
   0x1   :  { %1057 = sst [smem:[#allocation3_spill]] %s1028_s0  ;;  %vm180_vm4 = vcmask 15360   ;;  %v693_v28 = vmov 0   ;;  %vm258_vm9 = vcmask 11264   ;;  %vm458_vm12 = vcmask 254976  }
   0x2   :  { %1058 = sst [smem:[#allocation4_spill]] %s1029_s5  ;;  %661 = vset.pattern.permute.xlu0 %v693_v28  ;;  %662 = vset.pattern.permute.xlu2 %v693_v28  ;;  %v347_v28 = vld [vmem:[%s1038_s11 + $0x10] sm:$0xff] }
   0x3   :  { %1059 = sst [smem:[#allocation5_spill]] %s1030_s2 }
   0x4   :  { %1060 = sst [smem:[#allocation6_spill]] %s1031_s6 }
   0x5   :  { %1061 = sst [smem:[#allocation7_spill]] %s1032_s4 }
   0x6   :  { %1062 = sst [smem:[#allocation8_spill]] %s1033_s3 }
   0x7   :  { %1063 = sst [smem:[#allocation9_spill]] %s1034_s1 }
   0x8   :  { %1064 = sst [smem:[#allocation10_spill]] %s1035_s7 }
   0x9   :  { %s1065_s24 = sld [smem:[#allocation3_spill]] }
   0xa   :  { %s1066_s26 = sld [smem:[#allocation4_spill]] }
   0xb   :  { %s1067_s29 = sld [smem:[#allocation5_spill]] }
   0xc   :  { %s1068_s3 = sld [smem:[#allocation8_spill]] }
   0xd   :  { %s1069_s6 = sld [smem:[#allocation6_spill]] }
   0xe   :  { %s1070_s30 = sld [smem:[#allocation9_spill]] }
   0xf   :  { %v77_v0 = vld [vmem:[%s1065_s24] sm:$0xff]  ;;  %v78_v1 = vld [vmem:[%s1065_s24 + $0x8] sm:$0xf]  ;;  %s1071_s1 = sld [smem:[#allocation10_spill]] }
  0x10   :  { %v82_v2 = vpack.c.bf16 %v78_v1, %v77_v0  ;;  %v146_v3 = vld [vmem:[%s1066_s26 + $0x18] sm:$0xff]  ;;  %v145_v4 = vld [vmem:[%s1066_s26 + $0x10] sm:$0xff]  ;;  %v144_v7 = vld [vmem:[%s1066_s26 + $0x8] sm:$0xff]  ;;  %s1072_s4 = sld [smem:[#allocation7_spill]] }
  0x11   :  { %166 = vmatpush.msra.mxu2 %v146_v3  ;;  %v831_v6 = vld [vmem:[%s1067_s29] sm:$0x1] }
  0x12   :  { %v89_v5 = vsel %vm87_vm0, %v82_v2, 0  ;;  %v143_v8 = vld [vmem:[%s1066_s26] sm:$0xff]  ;;  %v108_v12 = vld [vmem:[%s1068_s3 + $0x18] sm:$0xff]  ;;  %v107_v13 = vld [vmem:[%s1068_s3 + $0x10] sm:$0xff] }
  0x13   :  { %98 = vmatpush.bf16.msra.mxu0 %v89_v5  ;;  %167 = vmatpush.msra.mxu2 %v145_v4  ;;  %v106_v14 = vld [vmem:[%s1068_s3 + $0x8] sm:$0xff]  ;;  %v105_v15 = vld [vmem:[%s1068_s3] sm:$0xff] }
  0x14   :  { %132 = vmatpush.msra.mxu1 %v108_v12  ;;  %v663_v16 = vld [vmem:[%s1069_s6] ss:$0 sm:$0xff]  ;;  %v658_v20 = vld [vmem:[%s1070_s30] sm:$0x30] }
  0x15   :  { %168 = vmatpush.msra.mxu2 %v144_v7  ;;  %v641_v19 = vld [vmem:[%s1070_s30] sm:$0xf]  ;;  %v211_v24 = vld [vmem:[%s1071_s1 + $0x18] sm:$0xff]  ;;  %v210_v25 = vld [vmem:[%s1071_s1 + $0x10] sm:$0xff] }
  0x16   :  { %635 = vmatmul.msk.bf16.vlgmr.msra.gmra.mxu0 %vm83_vm1, %v831_v6  ;;  %133 = vmatpush.msra.mxu1 %v107_v13  ;;  %v642_v23 = vor.u32 %v658_v20, %v641_v19  ;;  %v209_v26 = vld [vmem:[%s1071_s1 + $0x8] sm:$0xff]  ;;  %v208_v27 = vld [vmem:[%s1071_s1] sm:$0xff]  ;;  %v399_v20 = vld [vmem:[%s1036_s10 + $0x10] sm:$0xff] }
  0x17   :  { %169 = vmatpush.msra.mxu2 %v143_v8  ;;  %v664_v30 = vld [vmem:[%s1072_s4] ss:$0 sm:$0xff]  ;;  %v80_v45 = vld [vmem:[%s1070_s30 + $0x4] sm:$0x3] }
  0x18   :  { %134 = vmatpush.msra.mxu1 %v106_v14  ;;  %v79_v44 = vld [vmem:[%s1070_s30] sm:$0xf]  ;;  %v242_v48 = vunpack.c.l.bf16 %v80_v45 }
  0x19   :  { %230 = vmatpush.msrb.mxu2 %v211_v24  ;;  %v241_v46 = vunpack.c.l.bf16 %v79_v44  ;;  %v666_v45 = vld [vmem:[%s1041_s14] ss:$0 sm:$0xff] }
  0x1a   :  { %135 = vmatpush.msra.mxu1 %v105_v15  ;;  %vm244_vm8 = vcmp.gt.f32.partialorder %v242_v48, 0.0 }
  0x1b   :  { %636 = vmatmul.msk.f32.vlgmr.msra.gmra.mxu1 %vm113_vm2, %v77_v0  ;;  %231 = vmatpush.msrb.mxu2 %v210_v25  ;;  %vm243_vm7 = vcmp.gt.f32.partialorder %v241_v46, 0.0 }
  0x1d   :  { %232 = vmatpush.msrb.mxu2 %v209_v26  ;;  %v348_v26 = vld [vmem:[%s1038_s11 + $0x18] sm:$0xff] }
  0x1e   :  { %364 = vmatpush.msrb.mxu1 %v348_v26 }
  0x1f   :  { %233 = vmatpush.msrb.mxu2 %v208_v27  ;;  %v404_v27 = vld [vmem:[%s1039_s12 + $0x18] sm:$0xff] }
  0x20   :  { %365 = vmatpush.msrb.mxu1 %v347_v28  ;;  %v549_v28 = vld [vmem:[%s1048_s19 + $0x10] sm:$0xff] }
  0x23   :  { %637 = vmatmul.msk.f32.gmra.mxu1 %vm113_vm2, %v78_v1 }
  0x93   :  { %v100_v9 = vpop.f32.mrf.mxu0 }
  0x94   :  { %v841_v10 = vmax.f32 %v100_v9, 0.0 }
  0x96   :  { %638 = vmatmul.msk.f32.vlgmr.msra.gmra.mxu2 %vm113_vm2, %v841_v10 }
  0x97   :  { %417 = vmatpush.msra.mxu2 %v404_v27  ;;  %v550_v27 = vld [vmem:[%s1048_s19 + $0x18] sm:$0xff] }
  0x98   :  { %v137_v29 = vpop.f32.mrf.mxu1 }
  0x99   :  { %v884_v31 = vadd.f32 %v664_v30, %v137_v29  ;;  %v403_v29 = vld [vmem:[%s1039_s12 + $0x10] sm:$0xff] }
  0x9a   :  { %418 = vmatpush.msra.mxu2 %v403_v29  ;;  %v670_v29 = vld [vmem:[%s1045_s18] ss:$0 sm:$0xff] }
  0x9b   :  { %v102_v11 = vpop.f32.mrf.mxu0 }
  0xa0   :  { %v140_v34 = vpop.f32.mrf.mxu1 }
  0xa1   :  { %v141_v36 = vadd.f32 %v664_v30, %v140_v34  ;;  %v345_v34 = vld [vmem:[%s1038_s11] sm:$0xff] }
 0x119   :  { %v171_v17 = vpop.f32.mrf.mxu2 }
 0x11a   :  { %v172_v18 = vadd.f32 %v663_v16, %v171_v17 }
 0x11c   :  { %v174_v21 = vpack.c.bf16 %v172_v18, %v172_v18  ;;  %v400_v18 = vld [vmem:[%s1036_s10 + $0x18] sm:$0xff] }
 0x11e   :  { %v186_v22 = vsel %vm184_vm3, %v174_v21, 0  ;;  %v398_v21 = vld [vmem:[%s1036_s10 + $0x8] sm:$0xff] }
 0x11f   :  { %195 = vmatpush.bf16.msra.mxu3 %v186_v22  ;;  %v397_v22 = vld [vmem:[%s1036_s10] sm:$0xff] }
 0x122   :  { %643 = vmatmul.msk.bf16.vlgmr.msra.gmra.mxu3 %vm180_vm4, %v642_v23 }
 0x1a5   :  { %v197_v32 = vpop.f32.mrf.mxu3 }
 0x1a6   :  { %v198_v33 = vadd.f32 %v197_v32, %v884_v31  ;;  %v402_v32 = vld [vmem:[%s1039_s12 + $0x8] sm:$0xff] }
 0x1a7   :  { %419 = vmatpush.msra.mxu2 %v402_v32 }
 0x1a8   :  { %vm202_vm5 = vcmp.gt.f32.partialorder %v198_v33, 0.0  ;;  %v204_v35 = vmul.f32 0.01, %v198_v33 }
 0x1aa   :  { %v206_v37 = vsel %vm202_vm5, %v198_v33, %v204_v35  ;;  %v401_v35 = vld [vmem:[%s1039_s12] sm:$0xff] }
 0x1ab   :  { %644 = vmatmul.msk.f32.vlgmr.msrb.gmra.mxu2 %vm113_vm2, %v206_v37  ;;  %v343_v37 = vld [vmem:[%s1040_s9 + $0x10] sm:$0xff] }
 0x1ac   :  { %420 = vmatpush.msra.mxu2 %v401_v35 }
 0x1ad   :  { %v199_v38 = vpop.f32.mrf.mxu3 }
 0x1ae   :  { %v200_v39 = vadd.f32 %v199_v38, %v141_v36  ;;  %v342_v38 = vld [vmem:[%s1040_s9 + $0x8] sm:$0xff] }
 0x1b0   :  { %v205_v40 = vmul.f32 0.01, %v200_v39  ;;  %vm203_vm6 = vcmp.gt.f32.partialorder %v200_v39, 0.0 }
 0x1b2   :  { %v207_v41 = vsel %vm203_vm6, %v200_v39, %v205_v40  ;;  %v341_v39 = vld [vmem:[%s1040_s9] sm:$0xff] }
 0x1b3   :  { %645 = vmatmul.msk.f32.gmra.mxu2 %vm113_vm2, %v207_v41  ;;  %v665_v40 = vld [vmem:[%s1037_s8] ss:$0 sm:$0xff] }
 0x22e   :  { %v235_v42 = vpop.f32.mrf.mxu2 }
 0x22f   :  { %247 = vperm.xlu0 %661, %v235_v42  }
 0x236   :  { %v238_v43 = vpop.f32.mrf.mxu2 }
 0x237   :  { %252 = vperm.xlu0 %661, %v238_v43  }
 0x2a1   :  { %v248_v47 = vpop.permute.xlu0 %247 }
 0x2a2   :  { %v255_v49 = vsel %vm243_vm7, %v248_v47, -1e+30 }
 0x2a3   :  { %v257_v52 = vsel %vm180_vm4, %v255_v49, -inf }
 0x2a9   :  { %v253_v50 = vpop.permute.xlu0 %252 }
 0x2aa   :  { %v256_v51 = vsel %vm244_vm8, %v253_v50, -1e+30 }
 0x2ab   :  { %v259_v53 = vsel %vm258_vm9, %v256_v51, -inf }
 0x2ac   :  { %v260_v54 = vmax.f32 %v257_v52, %v259_v53  ;;  %v667_v53 = vld [vmem:[%s1042_s13] ss:$0 sm:$0xff] }
 0x2ae   :  { %v261_v55 = vrot.slane %v260_v54, 4 }
 0x2b0   :  { %v262_v56 = vmax.f32 %v260_v54, %v261_v55 }
 0x2b2   :  { %v263_v57 = vrot.slane %v262_v56, 2 }
 0x2b4   :  { %v264_v58 = vmax.f32 %v262_v56, %v263_v57 }
 0x2b6   :  { %v265_v59 = vrot.slane %v264_v58, 1 }
 0x2b8   :  { %v266_v60 = vmax.f32 %v264_v58, %v265_v59  ;;  %v694_v59 = vmov 32.0  }
 0x2ba   :  { %v267_v61 = vmul.f32 %v266_v60, %v241_v46  ;;  %v268_v63 = vmul.f32 %v266_v60, %v242_v48 }
 0x2bc   :  { %v269_v62 = vsel %vm180_vm4, %v267_v61, 0.0  ;;  %v272_v0 = vsel %vm258_vm9, %v268_v63, 0.0 }
 0x2bd   :  { %270 = vadd.xlane.f32.xlu1 %v269_v62 }
 0x2c5   :  { %273 = vadd.xlane.f32.xlu1 %v272_v0 }
 0x330   :  { %v271_v1 = vpop.xlane.xlu1 %270 }
 0x331   :  { %v275_v2 = vsub.f32 %v235_v42, %v271_v1 }
 0x333   :  { %v277_v3 = vmul.f32 1.442695, %v275_v2 }
 0x335   :  { %673 = vpow2.f32 %v277_v3 }
 0x338   :  { %v274_v4 = vpop.xlane.xlu1 %273 }
 0x339   :  { %v276_v5 = vsub.f32 %v238_v43, %v274_v4 }
 0x33b   :  { %v674_v7 = vpop.eup %673  ;;  %v279_v8 = vmul.f32 1.442695, %v276_v5 }
 0x33c   :  { %283 = vperm.xlu2 %662, %v674_v7  }
 0x33d   :  { %675 = vpow2.f32 %v279_v8  ;;  %v499_v8 = vld [vmem:[%s1046_s17 + $0x18] sm:$0xff] }
 0x343   :  { %v676_v9 = vpop.eup %675 }
 0x344   :  { %288 = vperm.xlu2 %662, %v676_v9   ;;  %v310_v11 = vpack.c.bf16 %v676_v9, %v674_v7  ;;  %v498_v9 = vld [vmem:[%s1046_s17 + $0x10] sm:$0xff] }
 0x346   :  { %v312_v12 = vsel %vm87_vm0, %v310_v11, 0  ;;  %v497_v11 = vld [vmem:[%s1046_s17 + $0x8] sm:$0xff] }
 0x347   :  { %321 = vmatpush.bf16.msrb.mxu3 %v312_v12  ;;  %v496_v12 = vld [vmem:[%s1046_s17] sm:$0xff] }
 0x34a   :  { %647 = vmatmul.msk.bf16.vlgmr.msrb.gmra.mxu3 %vm83_vm1, %v831_v6 }
 0x34b   :  { %519 = vmatpush.msra.mxu3 %v499_v8 }
 0x34d   :  { %520 = vmatpush.msra.mxu3 %v498_v9 }
 0x34f   :  { %521 = vmatpush.msra.mxu3 %v497_v11 }
 0x351   :  { %522 = vmatpush.msra.mxu3 %v496_v12 }
 0x396   :  { %v284_v13 = vpop.permute.xlu2 %283 }
 0x397   :  { %v291_v15 = vmul.f32 %v284_v13, %v884_v31  ;;  %v346_v31 = vld [vmem:[%s1038_s11 + $0x8] sm:$0xff] }
 0x398   :  { %366 = vmatpush.msrb.mxu1 %v346_v31  ;;  %v547_v31 = vld [vmem:[%s1048_s19] sm:$0xff] }
 0x39a   :  { %367 = vmatpush.msrb.mxu1 %v345_v34 }
 0x39e   :  { %v289_v14 = vpop.permute.xlu2 %288 }
 0x39f   :  { %v292_v16 = vmul.f32 %v289_v14, %v141_v36  ;;  %v344_v36 = vld [vmem:[%s1040_s9 + $0x18] sm:$0xff] }
 0x3a0   :  { %384 = vmatpush.msra.mxu1 %v344_v36 }
 0x3a1   :  { %v293_v17 = vpack.c.bf16 %v292_v16, %v291_v15 }
 0x3a2   :  { %385 = vmatpush.msra.mxu1 %v343_v37 }
 0x3a3   :  { %v295_v19 = vsel %vm87_vm0, %v293_v17, 0 }
 0x3a4   :  { %304 = vmatpush.bf16.msrb.mxu0 %v295_v19  ;;  %386 = vmatpush.msra.mxu1 %v342_v38 }
 0x3a6   :  { %387 = vmatpush.msra.mxu1 %v341_v39 }
 0x3a7   :  { %646 = vmatmul.msk.bf16.vlgmr.msrb.gmra.mxu0 %vm83_vm1, %v831_v6 }
 0x3a8   :  { %437 = vmatpush.msra.mxu0 %v400_v18 }
 0x3aa   :  { %438 = vmatpush.msra.mxu0 %v399_v20 }
 0x3ac   :  { %439 = vmatpush.msra.mxu0 %v398_v21 }
 0x3ae   :  { %440 = vmatpush.msra.mxu0 %v397_v22  ;;  %v668_v22 = vld [vmem:[%s1043_s15] ss:$0 sm:$0xff] }
 0x3b7   :  { %651 = vmatmul.msk.f32.vlgmr.msra.gmra.mxu0 %vm113_vm2, %v841_v10 }
 0x3cd   :  { %v323_v23 = vpop.f32.mrf.mxu3 }
 0x3ce   :  { %vm327_vm10 = vcmp.gt.f32.partialorder %v323_v23, 0.0 }
 0x3cf   :  { %v328_v24 = vsel %vm327_vm10, %v323_v23, 1.0  ;;  %vm629_vm10 = vcmask 1024  }
 0x3d0   :  { %677 = vrcp.f32 %v328_v24 }
 0x3d5   :  { %v325_v25 = vpop.f32.mrf.mxu3 }
 0x3d6   :  { %v678_v6 = vpop.eup %677  ;;  %v669_v25 = vld [vmem:[%s1044_s16] ss:$0 sm:$0xff] }
 0x3d7   :  { %332 = vperm.xlu0 %661, %v678_v6  }
 0x424   :  { %v306_v30 = vpop.f32.mrf.mxu0 }
 0x42c   :  { %v308_v33 = vpop.f32.mrf.mxu0 }
 0x434   :  { %v442_v46 = vpop.f32.mrf.mxu0 }
 0x449   :  { %v333_v41 = vpop.permute.xlu0 %332 }
 0x44a   :  { %v335_v42 = vmul.f32 %v333_v41, %v306_v30  ;;  %v548_v30 = vld [vmem:[%s1048_s19 + $0x8] sm:$0xff] }
 0x44c   :  { %v340_v43 = vadd.f32 %v665_v40, %v335_v42 }
 0x44e   :  { %648 = vmatmul.msk.f32.vlgmr.msrb.gmra.mxu1 %vm113_vm2, %v340_v43  ;;  %650 = vmatmul.msk.f32.vlgmr.msra.gmra.mxu2 %vm113_vm2, %v340_v43 }
 0x44f   :  { %570 = vmatpush.msrb.mxu1 %v550_v27 }
 0x451   :  { %571 = vmatpush.msrb.mxu1 %v549_v28 }
 0x453   :  { %572 = vmatpush.msrb.mxu1 %v548_v30 }
 0x455   :  { %573 = vmatpush.msrb.mxu1 %v547_v31 }
 0x456   :  { %649 = vmatmul.msk.f32.vlgmr.msra.gmra.mxu1 %vm113_vm2, %v841_v10 }
 0x4cb   :  { %v369_v44 = vpop.f32.mrf.mxu1 }
 0x4d1   :  { %v422_v47 = vpop.f32.mrf.mxu2 }
 0x4d2   :  { %v443_v48 = vadd.f32 %v442_v46, %v422_v47 }
 0x4d3   :  { %v389_v51 = vpop.f32.mrf.mxu1 }
 0x4d4   :  { %v449_v49 = vadd.f32 %v666_v45, %v443_v48  ;;  %v390_v52 = vadd.f32 %v389_v51, %v369_v44  ;;  %v601_v48 = vld [vmem:[%s1049_s21 + $0x18] sm:$0xff]  ;;  %v599_v51 = vld [vmem:[%s1049_s21 + $0x8] sm:$0xff] }
 0x4d5   :  { %621 = vmatpush.msrb.mxu2 %v601_v48 }
 0x4d6   :  { %v451_v50 = vmul.f32 1.442695, %v449_v49  ;;  %v396_v10 = vadd.f32 %v667_v53, %v390_v52  ;;  %vm450_vm11 = vcmp.gt.f32.partialorder %v449_v49, 0.0  ;;  %v598_v52 = vld [vmem:[%s1049_s21] sm:$0xff] }
 0x4d8   :  { %679 = vpow2.f32 %v451_v50  ;;  %v671_v50 = vld [vmem:[%s1047_s20] ss:$0 sm:$0xff] }
 0x4d9   :  { %681 = vrcp.f32 %v694_v59 }
 0x4de   :  { %v680_v54 = vpop.eup %679 }
 0x4df   :  { %v652_v55 = vadd.f32 -1.0, %v680_v54  ;;  %v682_v60 = vpop.eup %681 }
 0x4e0   :  { %v463_v61 = vmul.f32 32.0, %v682_v60  ;;  %vm467_vm13 = vweird.f32 %v682_v60 }
 0x4e1   :  { %v454_v56 = vsel %vm450_vm11, %v449_v49, %v652_v55  ;;  %v600_v49 = vld [vmem:[%s1049_s21 + $0x10] sm:$0xff]  ;;  %v28_v55 = vstv %s1050_s22 }
 0x4e2   :  { %v455_v57 = vmul.f32 %v454_v56, %v396_v10  ;;  %v464_v62 = vsub.f32 1.0, %v463_v61  ;;  %622 = vmatpush.msrb.mxu2 %v600_v49  ;;  %29 = vst [vmem:[#allocation2] sm:$0x1] %v28_v55 }
 0x4e4   :  { %v459_v58 = vsel %vm458_vm12, %v455_v57, 0.0  ;;  %v465_v63 = vmul.f32 %v682_v60, %v464_v62  ;;  %623 = vmatpush.msrb.mxu2 %v599_v51 }
 0x4e5   :  { %460 = vadd.xlane.f32.xlu1 %v459_v58 }
 0x4e6   :  { %v466_v0 = vadd.f32 %v682_v60, %v465_v63  ;;  %624 = vmatpush.msrb.mxu2 %v598_v52 }
 0x4e8   :  { %v468_v1 = vsel %vm467_vm13, %v682_v60, %v466_v0 }
 0x558   :  { %v461_v2 = vpop.xlane.xlu1 %460 }
 0x559   :  { %v469_v3 = vmul.f32 %v468_v1, %v461_v2 }
 0x55b   :  { %v470_v4 = vsub.f32 %v455_v57, %v469_v3 }
 0x55d   :  { %v471_v5 = vmul.f32 %v470_v4, %v470_v4 }
 0x55f   :  { %v472_v7 = vsel %vm458_vm12, %v471_v5, 0.0  ;;  %v672_v5 = vld [vmem:[#allocation2] ss:$0 sm:$0xff] }
 0x560   :  { %473 = vadd.xlane.f32.xlu2 %v472_v7 }
 0x5d3   :  { %v474_v13 = vpop.xlane.xlu2 %473 }
 0x5d4   :  { %v475_v14 = vmul.f32 %v474_v13, %v468_v1 }
 0x5d6   :  { %v476_v15 = vadd.f32 1e-05, %v475_v14 }
 0x5d8   :  { %683 = vrsqrt.f32 %v476_v15  ;;  %vm483_vm15 = vweird.f32 %v476_v15 }
 0x5de   :  { %v684_v16 = vpop.eup %683 }
 0x5df   :  { %v478_v17 = vmul.f32 %v684_v16, %v476_v15  ;;  %vm484_vm14 = vweird.f32 %v684_v16 }
 0x5e0   :  { %vm485_vm0 = vmor %vm483_vm15, %vm484_vm14 }
 0x5e1   :  { %v479_v18 = vmul.f32 %v684_v16, %v478_v17 }
 0x5e3   :  { %v480_v19 = vmul.f32 0.5, %v479_v18 }
 0x5e5   :  { %v481_v20 = vsub.f32 1.5, %v480_v19 }
 0x5e7   :  { %v482_v21 = vmul.f32 %v684_v16, %v481_v20 }
 0x5e9   :  { %v486_v23 = vsel %vm485_vm0, %v684_v16, %v482_v21 }
 0x5ea   :  { %v487_v24 = vmul.f32 %v486_v23, %v470_v4 }
 0x5ec   :  { %v491_v6 = vmul.f32 %v668_v22, %v487_v24 }
 0x5ee   :  { %v495_v26 = vadd.f32 %v669_v25, %v491_v6 }
 0x5f0   :  { %653 = vmatmul.msk.f32.vlgmr.msra.gmra.mxu3 %vm113_vm2, %v495_v26 }
 0x673   :  { %v524_v32 = vpop.f32.mrf.mxu3 }
 0x674   :  { %v525_v33 = vadd.f32 %v670_v29, %v524_v32 }
 0x676   :  { %v654_v34 = vmul.f32 -1.442695, %v525_v33 }
 0x678   :  { %685 = vpow2.f32 %v654_v34 }
 0x67e   :  { %v686_v35 = vpop.eup %685 }
 0x67f   :  { %v530_v36 = vadd.f32 1.0, %v686_v35 }
 0x681   :  { %687 = vrcp.f32 %v530_v36  ;;  %v542_v40 = vand.u32 2147483648, %v530_v36  ;;  %v540_v42 = vand.u32 2147483647, %v530_v36  ;;  %vm536_vm3 = vweird.f32 %v530_v36 }
 0x683   :  { %v543_v44 = vor.u32 1.1754944e-38, %v542_v40  ;;  %vm541_vm5 = vcmp.eq.f32.partialorder %v540_v42, 8.507059e+37 }
 0x687   :  { %v688_v37 = vpop.eup %687 }
 0x688   :  { %v532_v38 = vmul.f32 %v688_v37, %v530_v36  ;;  %vm537_vm1 = vweird.f32 %v688_v37 }
 0x689   :  { %vm538_vm4 = vmor %vm536_vm3, %vm537_vm1 }
 0x68a   :  { %v533_v39 = vsub.f32 1.0, %v532_v38 }
 0x68c   :  { %v534_v41 = vmul.f32 %v688_v37, %v533_v39 }
 0x68e   :  { %v535_v43 = vadd.f32 %v688_v37, %v534_v41 }
 0x690   :  { %v539_v45 = vsel %vm538_vm4, %v688_v37, %v535_v43 }
 0x691   :  { %v544_v46 = vsel %vm541_vm5, %v543_v44, %v539_v45 }
 0x692   :  { %v546_v47 = vmul.f32 %v544_v46, %v525_v33 }
 0x694   :  { %655 = vmatmul.msk.f32.vlgmr.msrb.gmra.mxu1 %vm113_vm2, %v546_v47 }
 0x711   :  { %v575_v53 = vpop.f32.mrf.mxu1 }
 0x712   :  { %v576_v54 = vadd.f32 %v671_v50, %v575_v53 }
 0x714   :  { %v656_v10 = vmul.f32 -1.442695, %v576_v54 }
 0x716   :  { %689 = vpow2.f32 %v656_v10 }
 0x71c   :  { %v690_v56 = vpop.eup %689 }
 0x71d   :  { %v581_v57 = vadd.f32 1.0, %v690_v56 }
 0x71f   :  { %691 = vrcp.f32 %v581_v57  ;;  %v593_v61 = vand.u32 2147483648, %v581_v57  ;;  %v591_v63 = vand.u32 2147483647, %v581_v57  ;;  %vm587_vm7 = vweird.f32 %v581_v57 }
 0x721   :  { %v594_v1 = vor.u32 1.1754944e-38, %v593_v61  ;;  %vm592_vm9 = vcmp.eq.f32.partialorder %v591_v63, 8.507059e+37 }
 0x725   :  { %v692_v58 = vpop.eup %691 }
 0x726   :  { %v583_v59 = vmul.f32 %v692_v58, %v581_v57  ;;  %vm588_vm6 = vweird.f32 %v692_v58 }
 0x727   :  { %vm589_vm8 = vmor %vm587_vm7, %vm588_vm6 }
 0x728   :  { %v584_v60 = vsub.f32 1.0, %v583_v59 }
 0x72a   :  { %v585_v62 = vmul.f32 %v692_v58, %v584_v60 }
 0x72c   :  { %v586_v0 = vadd.f32 %v692_v58, %v585_v62 }
 0x72e   :  { %v590_v2 = vsel %vm589_vm8, %v692_v58, %v586_v0 }
 0x72f   :  { %v595_v3 = vsel %vm592_vm9, %v594_v1, %v590_v2 }
 0x730   :  { %v597_v4 = vmul.f32 %v595_v3, %v576_v54 }
 0x732   :  { %657 = vmatmul.msk.f32.vlgmr.msrb.gmra.mxu2 %vm113_vm2, %v597_v4 }
 0x7b5   :  { %v626_v7 = vpop.f32.mrf.mxu2 }
 0x7b6   :  { %v627_v8 = vadd.f32 %v672_v5, %v626_v7 }
 0x7b8   :  { %630 = vst.msk [vmem:[%s1051_s23] sm:$0x3] %vm629_vm10, %v627_v8 }

// kernel: gatom_forward.4
= control target key start
LH: loop header
LB: loop body
LE: loop exit
PB: predicated region body
PF: predicated region fallthrough
CT: control target
= control target key end

     0   :  { %s3284_s0 = inlined_call_operand.vmem [shape: f32[12,32], index: 0, kind: input, shape index: {}]   ;;  %s3285_s1 = inlined_call_operand.vmem [shape: f32[24,32], index: 1, kind: input, shape index: {}]   ;;  %s3286_s2 = inlined_call_operand.vmem [shape: bf16[24,12], index: 2, kind: input, shape index: {}]   ;;  %s3287_s3 = inlined_call_operand.vmem [shape: bf16[24,12], index: 3, kind: input, shape index: {}]   ;;  %s3288_s4 = inlined_call_operand.hbm [shape: bf16[12,24], index: 4, kind: input, shape index: {}]   ;;  %s3289_s5 = inlined_call_operand.hbm [shape: f32[3,1,32], index: 5, kind: input, shape index: {}]   ;;  %s3290_s6 = inlined_call_operand.hbm [shape: f32[3,1,32], index: 6, kind: input, shape index: {}]   ;;  %s3291_s7 = inlined_call_operand.vmem [shape: f32[3,32,32], index: 7, kind: input, shape index: {}]   ;;  %s3292_s8 = inlined_call_operand.hbm [shape: f32[3,1,32], index: 8, kind: input, shape index: {}]   ;;  %s3293_s9 = inlined_call_operand.vmem [shape: f32[3,32,32], index: 9, kind: input, shape index: {}]   ;;  %s3294_s10 = inlined_call_operand.hbm [shape: f32[3,1,32], index: 10, kind: input, shape index: {}]   ;;  %s3295_s11 = inlined_call_operand.hbm [shape: f32[3,32,32], index: 11, kind: input, shape index: {}]   ;;  %s3296_s12 = inlined_call_operand.vmem [shape: f32[3,32,1], index: 12, kind: input, shape index: {}]   ;;  %s3297_s13 = inlined_call_operand.hbm [shape: f32[3,1,32], index: 13, kind: input, shape index: {}]   ;;  %s3298_s14 = inlined_call_operand.hbm [shape: f32[3,32,32], index: 14, kind: input, shape index: {}]   ;;  %s3299_s15 = inlined_call_operand.hbm [shape: f32[3,32,32], index: 15, kind: input, shape index: {}]   ;;  %s3300_s16 = inlined_call_operand.hbm [shape: f32[3,32,32], index: 16, kind: input, shape index: {}]   ;;  %s3301_s17 = inlined_call_operand.hbm [shape: f32[3,32,32], index: 17, kind: input, shape index: {}]   ;;  %s3302_s18 = inlined_call_operand.hbm [shape: f32[3,1,32], index: 18, kind: input, shape index: {}]   ;;  %s3303_s19 = inlined_call_operand.hbm [shape: f32[3,1,32], index: 19, kind: input, shape index: {}]   ;;  %s3304_s20 = inlined_call_operand.vmem [shape: f32[12,32], index: 20, kind: output, shape index: {}]  }
   0x1   :  { %3325 = sst [smem:[#allocation36_spill]] %s3284_s0 }
   0x2   :  { %3326 = sst [smem:[#allocation37_spill]] %s3285_s1 }
   0x3   :  { %3327 = sst [smem:[#allocation38_spill]] %s3286_s2 }
   0x4   :  { %3328 = sst [smem:[#allocation39_spill]] %s3287_s3 }
   0x5   :  { %3329 = sst [smem:[#allocation40_spill]] %s3288_s4 }
   0x6   :  { %3330 = sst [smem:[#allocation41_spill]] %s3289_s5 }
   0x7   :  { %3331 = sst [smem:[#allocation42_spill]] %s3290_s6 }
   0x8   :  { %3332 = sst [smem:[#allocation43_spill]] %s3291_s7 }
   0x9   :  { %3333 = sst [smem:[#allocation44_spill]] %s3292_s8 }
   0xa   :  { %3334 = sst [smem:[#allocation45_spill]] %s3293_s9 }
   0xb   :  { %3335 = sst [smem:[#allocation46_spill]] %s3294_s10 }
   0xc   :  { %3336 = sst [smem:[#allocation47_spill]] %s3295_s11 }
   0xd   :  { %3337 = sst [smem:[#allocation48_spill]] %s3296_s12 }
   0xe   :  { %3338 = sst [smem:[#allocation49_spill]] %s3304_s20 }
   0xf   :  { %25 = vsyncpa [#allocation3], 0 }
  0x10   :  { %26 = vsyncpa [#allocation5], 0 }
  0x11   :  { %28 = vsyncpa [#allocation5 + $0x1], 0 }
  0x12   :  { %29 = vsyncpa [#allocation8], 0 }
  0x13   :  { %31 = vsyncpa [#allocation8 + $0x1], 0 }
  0x14   :  { %32 = vsyncpa [#allocation11], 0 }
  0x15   :  { %34 = vsyncpa [#allocation11 + $0x1], 0 }
  0x16   :  { %35 = vsyncpa [#allocation14], 0 }
  0x17   :  { %37 = vsyncpa [#allocation14 + $0x1], 0 }
  0x18   :  { %38 = vsyncpa [#allocation17], 0 }
  0x19   :  { %40 = vsyncpa [#allocation17 + $0x1], 0 }
  0x1a   :  { %41 = vsyncpa [#allocation20], 0 }
  0x1b   :  { %43 = vsyncpa [#allocation20 + $0x1], 0  ;;  %s2735_s1 = smov 0   ;;  %s2737_s22 = smov 0  }
  0x1c   :  { %s2739_s23 = smov 0   ;;  %s2741_s24 = smov 0  }
  0x1d LB: > { %3339 = sst [smem:[#allocation29_spill]] %s2613_s22  ;;  %s2754_s2 = sadd.s32 4294967295, %s2621_s24   ;;  %s2621_s24 = sphi %s2741_s24, %s3379_s24   ;;  %s2617_s23 = sphi %s2739_s23, %s3382_s23   ;;  %s2613_s22 = sphi %s2737_s22, %s3381_s22   ;;  %s2609_s1 = sphi %s2735_s1, %s3380_s1  }
  0x1e   : > { %3340 = sst [smem:[#allocation30_spill]] %s2617_s23  ;;  %s2757_s25 = sadd.s32 1, %s2621_s24  }
  0x1f   : > { %3341 = sst [smem:[#allocation31_spill]] %s2754_s2  ;;  %s158_s3 = ssub.s32 %s2621_s24, %s2757_s25 }
  0x20   : > { %3342 = sst [smem:[#allocation32_spill]] %s2757_s25  ;;  %s161_s26 = sadd.s32 1, %s2617_s23 }
  0x21   : > { %p159_p0 = scmp.eq.s32.totalorder %s158_s3, 0  ;;  %p168_p1 = scmp.ne.s32.totalorder %s2617_s23, %s2613_s22 }
  0x22   : > { %p169_p2 = scmp.eq.s32.totalorder %s2621_s24, 0  ;;  %p174_p3 = scmp.ne.s32.totalorder %s2613_s22, %s2609_s1 }
  0x23   : > { %s2767_s27 = scalar_select %p159_p0, %s2617_s23, %s161_s26  }
  0x24   : > { %p2769_p4 = por %p169_p2, %p168_p1  ;;  %p175_p5 = scmp.eq.s32.totalorder %s2754_s2, 0 }
  0x25   : > { %3343 = sst [smem:[#allocation33_spill]] %s2767_s27  ;;  %p2011_p6 = scmp.ge.s32.totalorder %s2621_s24, 1 }
  0x26   : > { %p570_p7 = scmp.lt.s32.totalorder %s2621_s24, 4  ;;  %p2778_p8 = por %p175_p5, %p174_p3 }
  0x27   : > { %p2012_p9 = scmp.ne.s32.totalorder %s2754_s2, 0  ;;  %s3349_s21 = sld [smem:[#allocation40_spill]] }
  0x28   : > { %s3345_s4 = scalar_select %p2778_p8, 1, 0 }
  0x29   : > { %p2783_p10 = pnand %p2011_p6, %p570_p7  ;;  %s2623_s3 = smov [#allocation2]  }
  0x2a   : > { %3346 = sst [smem:[#allocation34_spill]] %s3345_s4  ;;  %s595_s26 = sshll.u32 %s2623_s3, 4  ;;  %s596_s26 = int_to_ptr.vmem [resolvable:$true] %s595_s26 }
  0x2b   : > { %s3347_s29 = scalar_select %p2783_p10, 1, 0 }
  0x2c   : > { %p2122_p11 = pneg %p2783_p10  ;;  %s2624_s27 = smov 64  }
  0x2d   : > { %3348 = sst [smem:[#allocation35_spill]] %s3347_s29  ;;  %s593_s1 = sshll.u32 %s3349_s21, 4  ;;  %s594_s1 = int_to_ptr.hbm [resolvable:$true] %s593_s1 }
  0x2e   : > { %p2123_p12 = pnand %p2122_p11, %p175_p5  ;;  %s2625_s25 = smov 4  }
  0x2f   : > { %p2013_p13 = scmp.ge.s32.totalorder %s2621_s24, 3 }
  0x30   : > { %2125 = dma.hbm_to_vmem [thread:$0]  (!%p2123_p12), %s594_s1, 128, %s596_s26, [#allocation3], %s2624_s27, %s2624_s27, %s2625_s25  }
  0x31   : > { %605 = sbr.rel (%p2013_p13) target bundleno = 250 (0xfa), region = 36  ;;  %s2796_s30 = sand.u32 (!%p2013_p13), 1, %s2621_s24  }
  0x32   : > { %s2799_s0 = sand.u32 (!%p2013_p13), 1, %s2617_s23   ;;  %s3350_s5 = sld [smem:[#allocation41_spill]] (!%p2013_p13) }
  0x33   : > { %s612_s12 = scalar_lea.vmem (!%p2013_p13), [#allocation4], %s2799_s0  ;;  %s3317_s27 = scalar_lea.sflag (!%p2013_p13), [#allocation5], %s2796_s30 }
  0x34   : > { %s619_s9 = sshll.u32 (!%p2013_p13), %s612_s12, 4  ;;  %s620_s9 = int_to_ptr.vmem [resolvable:$true] %s619_s9 }
  0x38   : > { %s615_s20 = scalar_lea.hbm %s3350_s5, %s2621_s24  ;;  %s2233_s4 = scalar_lea.hbm %s3350_s5, 3 }
  0x39   : > { %s617_s25 = sshll.u32 %s615_s20, 4  ;;  %s618_s25 = int_to_ptr.hbm [resolvable:$true] %s617_s25 }
  0x3a   : > { %s2227_s1 = sshra.s32 %s618_s25, 4  ;;  %s2228_s1 = int_to_ptr.hbm [resolvable:$true] %s2227_s1 }
  0x3b   : > { %s2229_s26 = scalar_lea.hbm %s2228_s1, 1  ;;  %p2234_p3 = scmp.lt.s32.totalorder %s2228_s1, %s3350_s5 }
  0x3c   : > { %p2230_p0 = scmp.ne.s32.totalorder %s2228_s1, %s2229_s26  ;;  %p2235_p6 = scmp.lt.s32.totalorder %s2233_s4, %s2229_s26 }
  0x3e   : > { %p2231_p1 = pnand %p2230_p0, %p2769_p4  ;;  %p2236_p7 = por %p2235_p6, %p2234_p3 }
  0x40   : > { %p2232_p2 = pneg %p2231_p1 }
  0x42   : > { %p2237_p11 = pnand %p2236_p7, %p2232_p2 }
  0x44   : > { %2240 = shalt.err (!%p2237_p11)
}
  0x45   : > { %2096 = dma.hbm_to_vmem [thread:$0]  (%p2769_p4), %s618_s25, 16, %s620_s9, %s3317_s27  }
  0x46   : > { %s3351_s8 = sld [smem:[#allocation44_spill]]  ;;  %s654_s21 = scalar_lea.vmem [#allocation7], %s2799_s0 }
  0x47   : > { %s661_s1 = sshll.u32 %s654_s21, 4  ;;  %s3318_s4 = scalar_lea.sflag [#allocation8], %s2796_s30  ;;  %s662_s1 = int_to_ptr.vmem [resolvable:$true] %s661_s1 }
  0x4c   : > { %s657_s20 = scalar_lea.hbm %s3351_s8, %s2621_s24  ;;  %s2261_s9 = scalar_lea.hbm %s3351_s8, 3 }
  0x4d   : > { %s659_s23 = sshll.u32 %s657_s20, 4  ;;  %s660_s23 = int_to_ptr.hbm [resolvable:$true] %s659_s23 }
  0x4e   : > { %s2255_s26 = sshra.s32 %s660_s23, 4  ;;  %s2256_s26 = int_to_ptr.hbm [resolvable:$true] %s2255_s26 }
  0x4f   : > { %s2257_s3 = scalar_lea.hbm %s2256_s26, 1  ;;  %p2262_p1 = scmp.lt.s32.totalorder %s2256_s26, %s3351_s8 }
  0x50   : > { %p2258_p12 = scmp.ne.s32.totalorder %s2256_s26, %s2257_s3  ;;  %p2263_p2 = scmp.lt.s32.totalorder %s2261_s9, %s2257_s3 }
  0x52   : > { %p2259_p13 = pnand %p2258_p12, %p2769_p4  ;;  %p2264_p3 = por %p2263_p2, %p2262_p1 }
  0x54   : > { %p2260_p0 = pneg %p2259_p13 }
  0x56   : > { %p2265_p6 = pnand %p2264_p3, %p2260_p0 }
  0x58   : > { %2268 = shalt.err (!%p2265_p6)
}
  0x59   : > { %2098 = dma.hbm_to_vmem [thread:$0]  (%p2769_p4), %s660_s23, 16, %s662_s1, %s3318_s4  }
  0x5a   : > { %s2838_s7 = sshll.u32 %s2799_s0, 5  ;;  %s2841_s5 = sshll.u32 %s2621_s24, 5 }
  0x5b   : > { %s3352_s11 = sld [smem:[#allocation47_spill]]  ;;  %s697_s26 = scalar_lea.vmem [#allocation10], %s2838_s7 }
  0x5c   : > { %s705_s3 = sshll.u32 %s697_s26, 4  ;;  %s3322_s25 = scalar_lea.sflag [#allocation11], %s2796_s30  ;;  %s706_s3 = int_to_ptr.vmem [resolvable:$true] %s705_s3 }
  0x61   : > { %s702_s21 = scalar_lea.hbm %s3352_s11, %s2841_s5  ;;  %s2289_s4 = scalar_lea.hbm %s3352_s11, 96 }
  0x62   : > { %s703_s9 = sshll.u32 %s702_s21, 4  ;;  %s704_s9 = int_to_ptr.hbm [resolvable:$true] %s703_s9 }
  0x63   : > { %s2283_s12 = sshra.s32 %s704_s9, 4  ;;  %s2284_s12 = int_to_ptr.hbm [resolvable:$true] %s2283_s12 }
  0x64   : > { %s2285_s27 = scalar_lea.hbm %s2284_s12, 32  ;;  %p2290_p13 = scmp.lt.s32.totalorder %s2284_s12, %s3352_s11 }
  0x65   : > { %p2286_p7 = scmp.ne.s32.totalorder %s2284_s12, %s2285_s27  ;;  %p2291_p0 = scmp.lt.s32.totalorder %s2289_s4, %s2285_s27 }
  0x67   : > { %p2287_p11 = pnand %p2286_p7, %p2769_p4  ;;  %p2292_p1 = por %p2291_p0, %p2290_p13 }
  0x69   : > { %p2288_p12 = pneg %p2287_p11 }
  0x6b   : > { %p2293_p2 = pnand %p2292_p1, %p2288_p12 }
  0x6d   : > { %2296 = shalt.err (!%p2293_p2)
}
  0x6e   : > { %s2626_s20 = smov 128   ;;  %s2627_s21 = smov 8  }
  0x6f   : > { %2100 = dma.hbm_to_vmem [thread:$0]  (%p2769_p4), %s704_s9, 512, %s706_s3, %s3322_s25, %s2626_s20, %s2626_s20, %s2627_s21  }
  0x70   : > { %s749_s27 = scalar_lea.hbm %s3298_s14, %s2841_s5  ;;  %s744_s12 = scalar_lea.vmem [#allocation13], %s2838_s7 }
  0x71   : > { %s750_s4 = sshll.u32 %s749_s27, 4  ;;  %s752_s23 = sshll.u32 %s744_s12, 4  ;;  %s751_s4 = int_to_ptr.hbm [resolvable:$true] %s750_s4  ;;  %s753_s23 = int_to_ptr.vmem [resolvable:$true] %s752_s23 }
  0x72   : > { %s3323_s1 = scalar_lea.sflag [#allocation14], %s2796_s30  ;;  %s2311_s22 = sshra.s32 %s751_s4, 4  ;;  %s2312_s22 = int_to_ptr.hbm [resolvable:$true] %s2311_s22 }
  0x73   : > { %s2313_s11 = scalar_lea.hbm %s2312_s22, 32  ;;  %s2317_s3 = scalar_lea.hbm %s3298_s14, 96 }
  0x74   : > { %p2314_p3 = scmp.ne.s32.totalorder %s2312_s22, %s2313_s11  ;;  %p2318_p11 = scmp.lt.s32.totalorder %s2312_s22, %s3298_s14 }
  0x75   : > { %p2319_p12 = scmp.lt.s32.totalorder %s2317_s3, %s2313_s11 }
  0x76   : > { %p2315_p6 = pnand %p2314_p3, %p2769_p4 }
  0x77   : > { %p2320_p13 = por %p2319_p12, %p2318_p11 }
  0x78   : > { %p2316_p7 = pneg %p2315_p6 }
  0x7a   : > { %p2321_p0 = pnand %p2320_p13, %p2316_p7 }
  0x7c   : > { %2324 = shalt.err (!%p2321_p0)
}
  0x7d   : > { %2102 = dma.hbm_to_vmem [thread:$0]  (%p2769_p4), %s751_s4, 512, %s753_s23, %s3323_s1, %s2626_s20, %s2626_s20, %s2627_s21  }
  0x7e   : > { %s793_s26 = scalar_lea.hbm %s3300_s16, %s2841_s5  ;;  %s788_s11 = scalar_lea.vmem [#allocation16], %s2838_s7 }
  0x7f   : > { %s796_s27 = sshll.u32 %s788_s11, 4  ;;  %s794_s12 = sshll.u32 %s793_s26, 4  ;;  %s797_s27 = int_to_ptr.vmem [resolvable:$true] %s796_s27  ;;  %s795_s12 = int_to_ptr.hbm [resolvable:$true] %s794_s12 }
  0x80   : > { %s785_s22 = scalar_lea.sflag [#allocation17], %s2796_s30  ;;  %s2339_s3 = sshra.s32 %s795_s12, 4  ;;  %s2340_s3 = int_to_ptr.hbm [resolvable:$true] %s2339_s3 }
  0x81   : > { %s2341_s9 = scalar_lea.hbm %s2340_s3, 32  ;;  %s2345_s4 = scalar_lea.hbm %s3300_s16, 96 }
  0x82   : > { %p2342_p1 = scmp.ne.s32.totalorder %s2340_s3, %s2341_s9  ;;  %p2346_p6 = scmp.lt.s32.totalorder %s2340_s3, %s3300_s16 }
  0x83   : > { %p2347_p7 = scmp.lt.s32.totalorder %s2345_s4, %s2341_s9 }
  0x84   : > { %p2343_p2 = pnand %p2342_p1, %p2769_p4 }
  0x85   : > { %p2348_p11 = por %p2347_p7, %p2346_p6 }
  0x86   : > { %p2344_p3 = pneg %p2343_p2 }
  0x88   : > { %p2349_p12 = pnand %p2348_p11, %p2344_p3 }
  0x8a   : > { %2352 = shalt.err (!%p2349_p12)
}
  0x8b   : > { %2104 = dma.hbm_to_vmem [thread:$0]  (%p2769_p4), %s795_s12, 512, %s797_s27, %s785_s22, %s2626_s20, %s2626_s20, %s2627_s21  }
  0x8c   : > { %s834_s26 = scalar_lea.hbm %s3302_s18, %s2621_s24  ;;  %s831_s3 = scalar_lea.vmem [#allocation19], %s2799_s0 }
  0x8d   : > { %s836_s11 = sshll.u32 %s834_s26, 4  ;;  %s838_s9 = sshll.u32 %s831_s3, 4  ;;  %s837_s11 = int_to_ptr.hbm [resolvable:$true] %s836_s11  ;;  %s839_s9 = int_to_ptr.vmem [resolvable:$true] %s838_s9 }
  0x8e   : > { %s3324_s8 = scalar_lea.sflag [#allocation20], %s2796_s30  ;;  %s2367_s4 = sshra.s32 %s837_s11, 4  ;;  %s2368_s4 = int_to_ptr.hbm [resolvable:$true] %s2367_s4 }
  0x8f   : > { %s2369_s23 = scalar_lea.hbm %s2368_s4, 1  ;;  %s2373_s27 = scalar_lea.hbm %s3302_s18, 3 }
  0x90   : > { %p2370_p13 = scmp.ne.s32.totalorder %s2368_s4, %s2369_s23  ;;  %p2374_p2 = scmp.lt.s32.totalorder %s2368_s4, %s3302_s18 }
  0x91   : > { %p2375_p3 = scmp.lt.s32.totalorder %s2373_s27, %s2369_s23 }
  0x92   : > { %p2371_p0 = pnand %p2370_p13, %p2769_p4 }
  0x93   : > { %p2376_p6 = por %p2375_p3, %p2374_p2 }
  0x94   : > { %p2372_p1 = pneg %p2371_p0 }
  0x96   : > { %p2377_p7 = pnand %p2376_p6, %p2372_p1 }
  0x98   : > { %2380 = shalt.err (!%p2377_p7)
}
  0x99   : > { %2106 = dma.hbm_to_vmem [thread:$0]  (%p2769_p4), %s837_s11, 16, %s839_s9, %s3324_s8  }
  0x9a   : > { %s3353_s6 = sld [smem:[#allocation42_spill]]  ;;  %s629_s2 = scalar_lea.vmem [#allocation6], %s2799_s0 }
  0x9b   : > { %s636_s12 = sshll.u32 %s629_s2, 4  ;;  %s637_s12 = int_to_ptr.vmem [resolvable:$true] %s636_s12 }
  0xa0   : > { %s632_s1 = scalar_lea.hbm %s3353_s6, %s2621_s24  ;;  %s2401_s11 = scalar_lea.hbm %s3353_s6, 3 }
  0xa1   : > { %s634_s3 = sshll.u32 %s632_s1, 4  ;;  %s635_s3 = int_to_ptr.hbm [resolvable:$true] %s634_s3 }
  0xa2   : > { %s2395_s4 = sshra.s32 %s635_s3, 4  ;;  %s2396_s4 = int_to_ptr.hbm [resolvable:$true] %s2395_s4 }
  0xa3   : > { %s2397_s23 = scalar_lea.hbm %s2396_s4, 1  ;;  %p2402_p0 = scmp.lt.s32.totalorder %s2396_s4, %s3353_s6 }
  0xa4   : > { %p2398_p11 = scmp.ne.s32.totalorder %s2396_s4, %s2397_s23  ;;  %p2403_p1 = scmp.lt.s32.totalorder %s2401_s11, %s2397_s23 }
  0xa6   : > { %p2399_p12 = pnand %p2398_p11, %p2769_p4  ;;  %p2404_p2 = por %p2403_p1, %p2402_p0 }
  0xa8   : > { %p2400_p13 = pneg %p2399_p12 }
  0xaa   : > { %p2405_p3 = pnand %p2404_p2, %p2400_p13 }
  0xac   : > { %2408 = shalt.err (!%p2405_p3)
}
  0xad   : > { %s3354_s29 = scalar_lea.sflag [#allocation5], %s2796_s30  ;;  %s3355_s10 = sld [smem:[#allocation46_spill]] }
  0xae   : > { %2097 = dma.hbm_to_vmem [thread:$0]  (%p2769_p4), %s635_s3, 16, %s637_s12, %s3354_s29  }
  0xaf   : > { %s679_s25 = scalar_lea.vmem [#allocation9], %s2799_s0 }
  0xb0   : > { %s686_s8 = sshll.u32 %s679_s25, 4  ;;  %s687_s8 = int_to_ptr.vmem [resolvable:$true] %s686_s8 }
  0xb3   : > { %s682_s2 = scalar_lea.hbm %s3355_s10, %s2621_s24  ;;  %s2429_s3 = scalar_lea.hbm %s3355_s10, 3 }
  0xb4   : > { %s684_s27 = sshll.u32 %s682_s2, 4  ;;  %s685_s27 = int_to_ptr.hbm [resolvable:$true] %s684_s27 }
  0xb5   : > { %s2423_s4 = sshra.s32 %s685_s27, 4  ;;  %s2424_s4 = int_to_ptr.hbm [resolvable:$true] %s2423_s4 }
  0xb6   : > { %s2425_s23 = scalar_lea.hbm %s2424_s4, 1  ;;  %p2430_p12 = scmp.lt.s32.totalorder %s2424_s4, %s3355_s10 }
  0xb7   : > { %p2426_p6 = scmp.ne.s32.totalorder %s2424_s4, %s2425_s23  ;;  %p2431_p13 = scmp.lt.s32.totalorder %s2429_s3, %s2425_s23 }
  0xb9   : > { %p2427_p7 = pnand %p2426_p6, %p2769_p4  ;;  %p2432_p0 = por %p2431_p13, %p2430_p12 }
  0xbb   : > { %p2428_p11 = pneg %p2427_p7 }
  0xbd   : > { %p2433_p1 = pnand %p2432_p0, %p2428_p11 }
  0xbf   : > { %2436 = shalt.err (!%p2433_p1)
}
  0xc0   : > { %s3356_s26 = scalar_lea.sflag [#allocation8], %s2796_s30  ;;  %s729_s25 = scalar_lea.hbm %s3297_s13, %s2621_s24 }
  0xc1   : > { %2099 = dma.hbm_to_vmem [thread:$0]  (%p2769_p4), %s685_s27, 16, %s687_s8, %s3356_s26  }
  0xc2   : > { %s731_s11 = sshll.u32 %s729_s25, 4  ;;  %s726_s9 = scalar_lea.vmem [#allocation12], %s2799_s0  ;;  %s732_s11 = int_to_ptr.hbm [resolvable:$true] %s731_s11 }
  0xc3   : > { %s733_s12 = sshll.u32 %s726_s9, 4  ;;  %s2451_s4 = sshra.s32 %s732_s11, 4  ;;  %s734_s12 = int_to_ptr.vmem [resolvable:$true] %s733_s12  ;;  %s2452_s4 = int_to_ptr.hbm [resolvable:$true] %s2451_s4 }
  0xc4   : > { %s2453_s23 = scalar_lea.hbm %s2452_s4, 1  ;;  %s2457_s27 = scalar_lea.hbm %s3297_s13, 3 }
  0xc5   : > { %p2454_p2 = scmp.ne.s32.totalorder %s2452_s4, %s2453_s23  ;;  %p2458_p7 = scmp.lt.s32.totalorder %s2452_s4, %s3297_s13 }
  0xc6   : > { %p2459_p11 = scmp.lt.s32.totalorder %s2457_s27, %s2453_s23 }
  0xc7   : > { %p2455_p3 = pnand %p2454_p2, %p2769_p4 }
  0xc8   : > { %p2460_p12 = por %p2459_p11, %p2458_p7 }
  0xc9   : > { %p2456_p6 = pneg %p2455_p3 }
  0xcb   : > { %p2461_p13 = pnand %p2460_p12, %p2456_p6 }
  0xcd   : > { %2464 = shalt.err (!%p2461_p13)
}
  0xce   : > { %s3357_s1 = scalar_lea.sflag [#allocation11], %s2796_s30  ;;  %s771_s9 = scalar_lea.hbm %s3299_s15, %s2841_s5 }
  0xcf   : > { %2101 = dma.hbm_to_vmem [thread:$0]  (%p2769_p4), %s732_s11, 16, %s734_s12, %s3357_s1  }
  0xd0   : > { %s772_s3 = sshll.u32 %s771_s9, 4  ;;  %s766_s29 = scalar_lea.vmem [#allocation15], %s2838_s7  ;;  %s773_s3 = int_to_ptr.hbm [resolvable:$true] %s772_s3 }
  0xd1   : > { %s774_s8 = sshll.u32 %s766_s29, 4  ;;  %s2479_s4 = sshra.s32 %s773_s3, 4  ;;  %s775_s8 = int_to_ptr.vmem [resolvable:$true] %s774_s8  ;;  %s2480_s4 = int_to_ptr.hbm [resolvable:$true] %s2479_s4 }
  0xd2   : > { %s2481_s23 = scalar_lea.hbm %s2480_s4, 32  ;;  %s2485_s11 = scalar_lea.hbm %s3299_s15, 96 }
  0xd3   : > { %p2482_p0 = scmp.ne.s32.totalorder %s2480_s4, %s2481_s23  ;;  %p2486_p3 = scmp.lt.s32.totalorder %s2480_s4, %s3299_s15 }
  0xd4   : > { %p2487_p6 = scmp.lt.s32.totalorder %s2485_s11, %s2481_s23 }
  0xd5   : > { %p2483_p1 = pnand %p2482_p0, %p2769_p4 }
  0xd6   : > { %p2488_p7 = por %p2487_p6, %p2486_p3 }
  0xd7   : > { %p2484_p2 = pneg %p2483_p1 }
  0xd9   : > { %p2489_p11 = pnand %p2488_p7, %p2484_p2 }
  0xdb   : > { %2492 = shalt.err (!%p2489_p11)
}
  0xdc   : > { %s3358_s2 = scalar_lea.sflag [#allocation14], %s2796_s30  ;;  %s815_s29 = scalar_lea.hbm %s3301_s17, %s2841_s5 }
  0xdd   : > { %2103 = dma.hbm_to_vmem [thread:$0]  (%p2769_p4), %s773_s3, 512, %s775_s8, %s3358_s2, %s2626_s20, %s2626_s20, %s2627_s21  }
  0xde   : > { %s816_s4 = sshll.u32 %s815_s29, 4  ;;  %s810_s23 = scalar_lea.vmem [#allocation18], %s2838_s7  ;;  %s817_s4 = int_to_ptr.hbm [resolvable:$true] %s816_s4 }
  0xdf   : > { %s818_s27 = sshll.u32 %s810_s23, 4  ;;  %s2507_s26 = sshra.s32 %s817_s4, 4  ;;  %s819_s27 = int_to_ptr.vmem [resolvable:$true] %s818_s27  ;;  %s2508_s26 = int_to_ptr.hbm [resolvable:$true] %s2507_s26 }
  0xe0   : > { %s2509_s11 = scalar_lea.hbm %s2508_s26, 32  ;;  %s2513_s3 = scalar_lea.hbm %s3301_s17, 96 }
  0xe1   : > { %p2510_p12 = scmp.ne.s32.totalorder %s2508_s26, %s2509_s11  ;;  %p2514_p1 = scmp.lt.s32.totalorder %s2508_s26, %s3301_s17 }
  0xe2   : > { %p2515_p2 = scmp.lt.s32.totalorder %s2513_s3, %s2509_s11 }
  0xe3   : > { %p2511_p13 = pnand %p2510_p12, %p2769_p4 }
  0xe4   : > { %p2516_p3 = por %p2515_p2, %p2514_p1 }
  0xe5   : > { %p2512_p0 = pneg %p2511_p13 }
  0xe7   : > { %p2517_p6 = pnand %p2516_p3, %p2512_p0 }
  0xe9   : > { %2520 = shalt.err (!%p2517_p6)
}
  0xea   : > { %2105 = dma.hbm_to_vmem [thread:$0]  (%p2769_p4), %s817_s4, 512, %s819_s27, %s785_s22, %s2626_s20, %s2626_s20, %s2627_s21  }
  0xeb   : > { %s851_s25 = scalar_lea.hbm %s3303_s19, %s2621_s24  ;;  %s848_s29 = scalar_lea.vmem [#allocation21], %s2799_s0 }
  0xec   : > { %s853_s9 = sshll.u32 %s851_s25, 4  ;;  %s855_s23 = sshll.u32 %s848_s29, 4  ;;  %s854_s9 = int_to_ptr.hbm [resolvable:$true] %s853_s9  ;;  %s856_s23 = int_to_ptr.vmem [resolvable:$true] %s855_s23 }
  0xed   : > { %s2535_s26 = sshra.s32 %s854_s9, 4  ;;  %s2541_s20 = scalar_lea.hbm %s3303_s19, 3  ;;  %s2536_s26 = int_to_ptr.hbm [resolvable:$true] %s2535_s26 }
  0xee   : > { %s2537_s11 = scalar_lea.hbm %s2536_s26, 1  ;;  %p2542_p13 = scmp.lt.s32.totalorder %s2536_s26, %s3303_s19 }
  0xef   : > { %p2538_p7 = scmp.ne.s32.totalorder %s2536_s26, %s2537_s11  ;;  %p2543_p0 = scmp.lt.s32.totalorder %s2541_s20, %s2537_s11 }
  0xf1   : > { %p2539_p11 = pnand %p2538_p7, %p2769_p4  ;;  %p2544_p1 = por %p2543_p0, %p2542_p13 }
  0xf3   : > { %p2540_p12 = pneg %p2539_p11 }
  0xf5   : > { %p2545_p2 = pnand %p2544_p1, %p2540_p12 }
  0xf7   : > { %2548 = shalt.err (!%p2545_p2)
}
  0xf8   : > { %s3359_s24 = scalar_lea.sflag [#allocation20], %s2796_s30 }
  0xf9   : > { %2107 = dma.hbm_to_vmem [thread:$0]  (%p2769_p4), %s854_s9, 16, %s856_s23, %s3359_s24  }
  0xfa PF: > { %864 = sbr.rel (%p2783_p10) target bundleno = 1680 (0x690), region = 100  ;;  %s3361_s4 = sld [smem:[#allocation31_spill]] (!%p2783_p10) }
  0xff   : > { %2580 = dma.done.wait (%p175_p5), [#allocation3], 128  }
 0x100   : > { %2582 = vsyncadd (%p175_p5), [#allocation3], 4294967168  ;;  %s3362_s27 = sld [smem:[#allocation29_spill]]  ;;  %s3039_s8 = sand.u32 1, %s3361_s4  }
 0x101   : > { %s872_s30 = scalar_lea.sflag [#allocation5], %s3039_s8 }
 0x106   : > { %s3042_s28 = sand.u32 1, %s3362_s27  }
 0x107   : > { %2584 = dma.done.wait (%p2778_p8), %s872_s30, 32  }
 0x108   : > { %2586 = vsyncadd (%p2778_p8), %s872_s30, 4294967264  ;;  %s890_s5 = scalar_lea.sflag [#allocation8], %s3039_s8 }
 0x109   : > { %2588 = dma.done.wait (%p2778_p8), %s890_s5, 32  }
 0x10a   : > { %2590 = vsyncadd (%p2778_p8), %s890_s5, 4294967264  ;;  %s2031_s9 = sshll.u32 %s3042_s28, 5  ;;  %s908_s23 = scalar_lea.sflag [#allocation11], %s3039_s8 }
 0x10b   : > { %s3060_s26 = scalar_lea.vmem [#allocation10], %s2031_s9 }
 0x10c   : > { %2592 = dma.done.wait (%p2778_p8), %s908_s23, 528  }
 0x10d   : > { %2594 = vsyncadd (%p2778_p8), %s908_s23, 4294966768  ;;  %s927_s12 = scalar_lea.sflag [#allocation14], %s3039_s8  ;;  %s3068_s1 = scalar_lea.vmem [#allocation13], %s2031_s9 }
 0x10e   : > { %2596 = dma.done.wait (%p2778_p8), %s927_s12, 1024  }
 0x10f   : > { %2598 = vsyncadd (%p2778_p8), %s927_s12, 4294966272  ;;  %s3074_s20 = scalar_lea.vmem [#allocation15], %s2031_s9  ;;  %s947_s21 = scalar_lea.sflag [#allocation17], %s3039_s8 }
 0x110   : > { %s3077_s22 = scalar_lea.vmem [#allocation16], %s2031_s9 }
 0x111   : > { %2600 = dma.done.wait (%p2778_p8), %s947_s21, 1024  }
 0x112   : > { %2602 = vsyncadd (%p2778_p8), %s947_s21, 4294966272  ;;  %s3083_s24 = scalar_lea.vmem [#allocation18], %s2031_s9  ;;  %s967_s0 = scalar_lea.sflag [#allocation20], %s3039_s8 }
 0x113   : > { %2604 = dma.done.wait (%p2778_p8), %s967_s0, 32  }
 0x114   : > { %2606 = vsyncadd (%p2778_p8), %s967_s0, 4294967264  ;;  %p1094_p4 = scmp.lt.s32.totalorder %s3361_s4, 2  ;;  %s3364_s21 = sld [smem:[#allocation43_spill]] }
 0x115   : > { %s3365_s8 = sld [smem:[#allocation45_spill]]  ;;  %s978_s2 = scalar_lea.vmem [#allocation21], %s3042_s28 }
 0x116   : > { %s1095_s30 = scalar_select %p1094_p4, %s3361_s4, 2 }
 0x117   : > { %s3366_s3 = sld [smem:[#allocation48_spill]] }
 0x118   : > { %s2088_s5 = sshll.u32 %s1095_s30, 5  ;;  %s3367_s10 = sld [smem:[#allocation36_spill]] (!%p2012_p9) }
 0x119   : > { %1113 = sbr.rel (%p2012_p9) target bundleno = 289 (0x121), region = 156  ;;  %s3368_s9 = sld [smem:[#allocation49_spill]] (!%p2012_p9) }
 0x11a   : > { %s3096_s11 = scalar_lea.vmem %s3364_s21, %s2088_s5 }
 0x11b   : > { %s3101_s27 = scalar_lea.vmem %s3365_s8, %s2088_s5 }
 0x11d   : > { %s3106_s0 = scalar_lea.vmem %s3366_s3, %s2088_s5 }
 0x11e   : > { %v1114_v0 = vld [vmem:[%s3367_s10] sm:$0xff]  ;;  %vm1116_vm0 = vcmask 261120   ;;  %v1115_v1 = vld [vmem:[%s3367_s10 + $0x8] sm:$0xf]  ;;  %vm1118_vm1 = vcmask 257024  }
 0x11f   : > { %1117 = vst.msk [vmem:[%s3368_s9] sm:$0xff] %vm1116_vm0, %v1114_v0 }
 0x120   : > { %1119 = vst.msk [vmem:[%s3368_s9 + $0x8] sm:$0xf] %vm1118_vm1, %v1115_v1 }
 0x121 PF: > { %s3369_s8 = sld [smem:[#allocation49_spill]]  ;;  %vm1124_vm2 = vcmask 261120   ;;  %vm1128_vm3 = vcmask 257024   ;;  %v2628_v6 = vmov 32.0   ;;  %v1190_v23 = vld [vmem:[%s3096_s11 + $0x18] sm:$0xff]  ;;  %v1189_v25 = vld [vmem:[%s3096_s11 + $0x10] sm:$0xff] }
 0x122   : > { %2177 = vrcp.f32 %v2628_v6  ;;  %v1227_v24 = vld [vmem:[%s3101_s27 + $0x18] sm:$0xff]  ;;  %1213 = vmatpush.msra.mxu0 %v1190_v23  ;;  %v1226_v26 = vld [vmem:[%s3101_s27 + $0x10] sm:$0xff]  ;;  %v1188_v27 = vld [vmem:[%s3096_s11 + $0x8] sm:$0xff]  ;;  %s3372_s12 = sld [smem:[#allocation37_spill]]  ;;  %s3374_s25 = scalar_lea.vmem [#allocation9], %s3042_s28  ;;  %vm1321_vm11 = vcmask 1045504  }
 0x123   : > { %1244 = vmatpush.msra.mxu1 %v1227_v24  ;;  %v1225_v28 = vld [vmem:[%s3101_s27 + $0x8] sm:$0xff]  ;;  %v1187_v29 = vld [vmem:[%s3096_s11] sm:$0xff]  ;;  %s3370_s11 = scalar_lea.vmem [#allocation4], %s3042_s28  ;;  %v1259_v61 = vld [vmem:[%s3060_s26 + $0x8] sm:$0xff]  ;;  %s3375_s6 = sld [smem:[#allocation38_spill]]  ;;  %vm1314_vm12 = vcmask 97280  }
 0x124   : > { %1214 = vmatpush.msra.mxu0 %v1189_v25  ;;  %v1224_v30 = vld [vmem:[%s3101_s27] sm:$0xff]  ;;  %s3371_s27 = scalar_lea.vmem [#allocation6], %s3042_s28  ;;  %v1261_v59 = vld [vmem:[%s3060_s26 + $0x18] sm:$0xff]  ;;  %v1258_v62 = vld [vmem:[%s3060_s26] sm:$0xff] }
 0x125   : > { %1245 = vmatpush.msra.mxu1 %v1226_v26  ;;  %v2170_v45 = vld [vmem:[%s3370_s11] ss:$0 sm:$0xff]  ;;  %1283 = vmatpush.msra.mxu2 %v1261_v59 }
 0x126   : > { %1215 = vmatpush.msra.mxu0 %v1188_v27  ;;  %v2171_v49 = vld [vmem:[%s3371_s27] ss:$0 sm:$0xff]  ;;  %s3376_s27 = sld [smem:[#allocation39_spill]] }
 0x127   : > { %v1120_v2 = vld [vmem:[%s3369_s8] sm:$0xff]  ;;  %v1121_v4 = vld [vmem:[%s3369_s8 + $0x8] sm:$0xf]  ;;  %1246 = vmatpush.msra.mxu1 %v1225_v28  ;;  %v1394_v28 = vld [vmem:[%s3106_s0 + $0x18] sm:$0xff] }
 0x128   : > { %v1125_v3 = vsel %vm1124_vm2, %v1120_v2, 0.0  ;;  %v1129_v5 = vsel %vm1128_vm3, %v1121_v4, 0.0  ;;  %v2178_v7 = vpop.eup %2177  ;;  %1216 = vmatpush.msra.mxu0 %v1187_v29  ;;  %v1260_v60 = vld [vmem:[%s3060_s26 + $0x10] sm:$0xff]  ;;  %v1256_v0 = vld [vmem:[%s3372_s12 + $0x8] sm:$0xff]  ;;  %s3373_s26 = scalar_lea.vmem [#allocation7], %s3042_s28  ;;  %v1393_v29 = vld [vmem:[%s3106_s0 + $0x10] sm:$0xff] }
 0x129   : > { %1126 = vadd.xlane.f32.xlu0 %v1125_v3  ;;  %v1133_v8 = vmul.f32 32.0, %v2178_v7  ;;  %vm1137_vm4 = vweird.f32 %v2178_v7  ;;  %1247 = vmatpush.msra.mxu1 %v1224_v30  ;;  %v1255_v63 = vld [vmem:[%s3372_s12] sm:$0xff]  ;;  %v1257_v3 = vld [vmem:[%s3372_s12 + $0x10] sm:$0xff]  ;;  %v1392_v30 = vld [vmem:[%s3106_s0 + $0x8] sm:$0xff] }
 0x12a   : > { %1284 = vmatpush.msra.mxu2 %v1260_v60 }
 0x12b   : > { %v1134_v9 = vsub.f32 1.0, %v1133_v8  ;;  %1416 = vmatpush.msrb.mxu1 %v1394_v28 }
 0x12c   : > { %1285 = vmatpush.msra.mxu2 %v1259_v61  ;;  %v3195_v23 = vld [vmem:[%s3376_s27 + $0x8] sm:$0xf] }
 0x12d   : > { %v1135_v10 = vmul.f32 %v2178_v7, %v1134_v9  ;;  %v1349_v25 = vunpack.c.l.b16 %v3195_v23  ;;  %1417 = vmatpush.msrb.mxu1 %v1393_v29 }
 0x12e   : > { %1286 = vmatpush.msra.mxu2 %v1258_v62  ;;  %v1300_v62 = vld [vmem:[%s3376_s27] sm:$0xff]  }
 0x12f   : > { %v1136_v11 = vadd.f32 %v2178_v7, %v1135_v10  ;;  %2047 = vmatmul.msk.f32.vlgmr.msra.gmra.mxu2 %vm1124_vm2, %v1255_v63  ;;  %v1351_v27 = vpack.c.b16 %v1349_v25, %v1349_v25  ;;  %1418 = vmatpush.msrb.mxu1 %v1392_v30  ;;  %v1431_v63 = vunpack.c.h.bf16 %v1300_v62 }
 0x131   : > { %1130 = vadd.xlane.f32.xlu0 %v1129_v5  ;;  %v1138_v12 = vsel %vm1137_vm4, %v2178_v7, %v1136_v11  ;;  %v2173_v5 = vld [vmem:[%s3374_s25] ss:$0 sm:$0xff]  ;;  %vm1434_vm0 = vcmp.gt.f32.partialorder %v1431_v63, 0.0 }
 0x137   : > { %2048 = vmatmul.msk.f32.gmra.mxu2 %vm1124_vm2, %v1256_v0  ;;  %v1430_v0 = vunpack.c.l.bf16 %v1300_v62 }
 0x139   : > { %vm1433_vm1 = vcmp.gt.f32.partialorder %v1430_v0, 0.0 }
 0x13f   : > { %2049 = vmatmul.msk.f32.gmra.mxu2 %vm1124_vm2, %v1257_v3 }
 0x19c   : > { %v1127_v13 = vpop.xlane.xlu0 %1126 }
 0x19d   : > { %v1139_v14 = vmul.f32 %v1138_v12, %v1127_v13 }
 0x19f   : > { %v1141_v15 = vsub.f32 %v1120_v2, %v1139_v14  ;;  %v1645_v14 = vld [vmem:[%s3074_s20 + $0x18] sm:$0xff] }
 0x1a1   : > { %v1143_v16 = vmul.f32 %v1141_v15, %v1141_v15 }
 0x1a3   : > { %v1145_v17 = vsel %vm1124_vm2, %v1143_v16, 0.0 }
 0x1a4   : > { %1146 = vadd.xlane.f32.xlu1 %v1145_v17  ;;  %v1131_v18 = vpop.xlane.xlu0 %1130  ;;  %v2091_v17 = vld [vmem:[%s3375_s6] sm:$0xff] }
 0x1a5   : > { %v1140_v19 = vmul.f32 %v1138_v12, %v1131_v18  ;;  %v2092_v18 = vld [vmem:[%s3376_s27] sm:$0xff] }
 0x1a7   : > { %v1142_v20 = vsub.f32 %v1121_v4, %v1140_v19  ;;  %v2172_v4 = vld [vmem:[%s3373_s26] ss:$0 sm:$0xff]  ;;  %v1644_v19 = vld [vmem:[%s3074_s20 + $0x10] sm:$0xff] }
 0x1a9   : > { %v1144_v21 = vmul.f32 %v1142_v20, %v1142_v20 }
 0x1ab   : > { %v1148_v22 = vsel %vm1128_vm3, %v1144_v21, 0.0  ;;  %v1642_v21 = vld [vmem:[%s3074_s20] sm:$0xff] }
 0x1ac   : > { %1149 = vadd.xlane.f32.xlu1 %v1148_v22  ;;  %v1299_v22 = vld [vmem:[%s3375_s6 + $0x8] sm:$0xf] }
 0x1ad   : > { %v1311_v24 = vunpack.c.l.b16 %v1299_v22 }
 0x1af   : > { %v1313_v26 = vpack.c.b16 %v1311_v24, %v1311_v24 }
 0x217   : > { %v1147_v31 = vpop.xlane.xlu1 %1146 }
 0x218   : > { %v1151_v32 = vmul.f32 %v1147_v31, %v1138_v12  ;;  %v1391_v31 = vld [vmem:[%s3106_s0] sm:$0xff] }
 0x219   : > { %1419 = vmatpush.msrb.mxu1 %v1391_v31 }
 0x21a   : > { %v1153_v33 = vadd.f32 1e-05, %v1151_v32 }
 0x21c   : > { %2179 = vrsqrt.f32 %v1153_v33  ;;  %vm1161_vm6 = vweird.f32 %v1153_v33 }
 0x21f   : > { %v1150_v34 = vpop.xlane.xlu1 %1149 }
 0x220   : > { %v1152_v35 = vmul.f32 %v1150_v34, %v1138_v12 }
 0x222   : > { %v2180_v36 = vpop.eup %2179  ;;  %v1154_v37 = vadd.f32 1e-05, %v1152_v35 }
 0x223   : > { %v1156_v38 = vmul.f32 %v2180_v36, %v1153_v33  ;;  %vm1162_vm5 = vweird.f32 %v2180_v36  ;;  %v1288_v33 = vpop.f32.mrf.mxu2 }
 0x224   : > { %2181 = vrsqrt.f32 %v1154_v37  ;;  %vm1163_vm7 = vmor %vm1161_vm6, %vm1162_vm5  ;;  %vm1171_vm9 = vweird.f32 %v1154_v37  ;;  %vm1515_vm5 = vcmask 1043456   ;;  %vm1511_vm6 = vcmask 195584  }
 0x225   : > { %v1157_v39 = vmul.f32 %v2180_v36, %v1156_v38  ;;  %v2629_v38 = vmov 0  }
 0x226   : > { %2167 = vset.pattern.permute.xlu2 %v2629_v38  ;;  %2168 = vset.pattern.permute.xlu0 %v2629_v38 }
 0x227   : > { %v1158_v40 = vmul.f32 0.5, %v1157_v39  ;;  %2169 = vset.pattern.permute.xlu1 %v2629_v38  ;;  %v2067_v38 = vld [vmem:[#allocation2] sm:$0xf] }
 0x229   : > { %v1159_v41 = vsub.f32 1.5, %v1158_v40 }
 0x22a   : > { %v2182_v42 = vpop.eup %2181 }
 0x22b   : > { %v1160_v43 = vmul.f32 %v2180_v36, %v1159_v41  ;;  %v1166_v44 = vmul.f32 %v2182_v42, %v1154_v37  ;;  %vm1172_vm8 = vweird.f32 %v2182_v42  ;;  %v1291_v40 = vpop.f32.mrf.mxu2 }
 0x22c   : > { %vm1173_vm10 = vmor %vm1171_vm9, %vm1172_vm8 }
 0x22d   : > { %v1164_v46 = vsel %vm1163_vm7, %v2180_v36, %v1160_v43  ;;  %v1167_v47 = vmul.f32 %v2182_v42, %v1166_v44 }
 0x22e   : > { %v1175_v48 = vmul.f32 %v1164_v46, %v1141_v15 }
 0x22f   : > { %v1168_v50 = vmul.f32 0.5, %v1167_v47 }
 0x230   : > { %v1180_v51 = vmul.f32 %v2170_v45, %v1175_v48 }
 0x231   : > { %v1169_v52 = vsub.f32 1.5, %v1168_v50 }
 0x232   : > { %v3145_v53 = vadd.f32 %v2171_v49, %v1180_v51 }
 0x233   : > { %v1170_v54 = vmul.f32 %v2182_v42, %v1169_v52 }
 0x234   : > { %2043 = vmatmul.msk.f32.vlgmr.msra.gmra.mxu0 %vm1124_vm2, %v3145_v53  ;;  %2045 = vmatmul.msk.f32.vlgmr.msra.gmra.mxu1 %vm1124_vm2, %v3145_v53 }
 0x235   : > { %v1174_v55 = vsel %vm1173_vm10, %v2182_v42, %v1170_v54 }
 0x236   : > { %v1176_v56 = vmul.f32 %v1174_v55, %v1142_v20  ;;  %v1643_v20 = vld [vmem:[%s3074_s20 + $0x8] sm:$0xff] }
 0x238   : > { %v1181_v57 = vmul.f32 %v2170_v45, %v1176_v56 }
 0x23a   : > { %v3151_v58 = vadd.f32 %v2171_v49, %v1181_v57  ;;  %v1294_v49 = vpop.f32.mrf.mxu2 }
 0x23c   : > { %2044 = vmatmul.msk.f32.gmra.mxu0 %vm1124_vm2, %v3151_v58  ;;  %2046 = vmatmul.msk.f32.gmra.mxu1 %vm1124_vm2, %v3151_v58 }
 0x2b1   : > { %v1218_v1 = vpop.f32.mrf.mxu0  ;;  %v1249_v2 = vpop.f32.mrf.mxu1 }
 0x2b2   : > { %v1219_v8 = vadd.f32 %v2172_v4, %v1218_v1  ;;  %v1250_v9 = vadd.f32 %v2173_v5, %v1249_v2  ;;  %v1432_v2 = vunpack.c.l.bf16 %v3195_v23 }
 0x2b4   : > { %vm1435_vm4 = vcmp.gt.f32.partialorder %v1432_v2, 0.0 }
 0x2b9   : > { %v1221_v6 = vpop.f32.mrf.mxu0  ;;  %v1252_v7 = vpop.f32.mrf.mxu1 }
 0x2ba   : > { %v1222_v10 = vadd.f32 %v2172_v4, %v1221_v6  ;;  %v1253_v11 = vadd.f32 %v2173_v5, %v1252_v7 }
 0x2bc   : > { %v1305_v12 = vpack.c.bf16 %v1222_v10, %v1219_v8  ;;  %v1343_v13 = vpack.c.bf16 %v1253_v11, %v1250_v9 }
 0x2be   : > { %v1323_v15 = vsel %vm1321_vm11, %v1305_v12, 0  ;;  %v1359_v16 = vsel %vm1321_vm11, %v1343_v13, 0 }
 0x2bf   : > { %1332 = vmatpush.bf16.msra.mxu3 %v1323_v15  ;;  %1368 = vmatpush.bf16.msrb.mxu0 %v1359_v16 }
 0x2c2   : > { %2054 = vmatmul.msk.bf16.vlgmr.msra.gmra.mxu3 %vm1314_vm12, %v2091_v17  ;;  %2060 = vmatmul.msk.bf16.vlgmr.msrb.gmra.mxu0 %vm1314_vm12, %v2092_v18 }
 0x2c3   : > { %1685 = vmatpush.msra.mxu0 %v1645_v14 }
 0x2c5   : > { %1686 = vmatpush.msra.mxu0 %v1644_v19 }
 0x2c7   : > { %1687 = vmatpush.msra.mxu0 %v1643_v20 }
 0x2c9   : > { %1688 = vmatpush.msra.mxu0 %v1642_v21 }
 0x2d2   : > { %2055 = vmatmul.msk.bf16.gmra.mxu3 %vm1314_vm12, %v1313_v26  ;;  %2061 = vmatmul.msk.bf16.gmra.mxu0 %vm1314_vm12, %v1351_v27 }
 0x2e2   : > { %2077 = vmatmul.msk.f32.vlgmr.msra.gmra.mxu0 %vm1124_vm2, %v3145_v53 }
 0x2ea   : > { %2078 = vmatmul.msk.f32.gmra.mxu0 %vm1124_vm2, %v3151_v58 }
 0x33f   : > { %v1370_v32 = vpop.f32.mrf.mxu0 }
 0x345   : > { %v3208_v34 = vpop.f32.mrf.mxu3 }
 0x346   : > { %v1371_v35 = vadd.f32 %v1370_v32, %v3208_v34 }
 0x347   : > { %v1372_v36 = vpop.f32.mrf.mxu0 }
 0x348   : > { %v1379_v37 = vadd.f32 %v1371_v35, %v1288_v33 }
 0x34a   : > { %vm1382_vm13 = vcmp.gt.f32.partialorder %v1379_v37, 0.0  ;;  %v1385_v39 = vmul.f32 0.01, %v1379_v37 }
 0x34c   : > { %v1388_v41 = vsel %vm1382_vm13, %v1379_v37, %v1385_v39  ;;  %v2093_v39 = vld [vmem:[#allocation2] sm:$0x30] }
 0x34d   : > { %v3211_v42 = vpop.f32.mrf.mxu3  ;;  %2062 = vmatmul.msk.f32.vlgmr.msrb.gmra.mxu1 %vm1124_vm2, %v1388_v41 }
 0x34e   : > { %v1373_v43 = vadd.f32 %v1372_v36, %v3211_v42 }
 0x34f   : > { %v1375_v44 = vpop.f32.mrf.mxu0 }
 0x350   : > { %v1380_v45 = vadd.f32 %v1373_v43, %v1291_v40  ;;  %v2068_v43 = vor.u32 %v2093_v39, %v2067_v38 }
 0x352   : > { %v1386_v46 = vmul.f32 0.01, %v1380_v45  ;;  %vm1383_vm14 = vcmp.gt.f32.partialorder %v1380_v45, 0.0 }
 0x354   : > { %v1389_v47 = vsel %vm1383_vm14, %v1380_v45, %v1386_v46 }
 0x355   : > { %v3215_v48 = vpop.f32.mrf.mxu3  ;;  %2063 = vmatmul.msk.f32.gmra.mxu1 %vm1124_vm2, %v1389_v47 }
 0x356   : > { %v1376_v50 = vadd.f32 %v1375_v44, %v3215_v48 }
 0x357   : > { %v1377_v51 = vpop.f32.mrf.mxu0 }
 0x358   : > { %v1381_v52 = vadd.f32 %v1376_v50, %v1294_v49 }
 0x35a   : > { %v1387_v54 = vmul.f32 0.01, %v1381_v52  ;;  %vm1384_vm15 = vcmp.gt.f32.partialorder %v1381_v52, 0.0 }
 0x35c   : > { %v1390_v55 = vsel %vm1384_vm15, %v1381_v52, %v1387_v54 }
 0x35d   : > { %v1341_v56 = vpop.f32.mrf.mxu3  ;;  %2064 = vmatmul.msk.f32.gmra.mxu1 %vm1124_vm2, %v1390_v55  ;;  %v1579_v55 = vld [vmem:[%s3068_s1 + $0x18] sm:$0xff] }
 0x35e   : > { %v1578_v56 = vld [vmem:[%s3068_s1 + $0x10] sm:$0xff] }
 0x3ca   : > { %v1421_v57 = vpop.f32.mrf.mxu1 }
 0x3cb   : > { %1438 = vperm.xlu2 %2167, %v1421_v57  }
 0x3d2   : > { %v1424_v59 = vpop.f32.mrf.mxu1 }
 0x3d3   : > { %1443 = vperm.xlu2 %2167, %v1424_v59  }
 0x3da   : > { %v1427_v60 = vpop.f32.mrf.mxu1 }
 0x3db   : > { %1448 = vperm.xlu0 %2168, %v1427_v60  }
 0x425   : > { %v1439_v61 = vpop.permute.xlu2 %1438 }
 0x426   : > { %v1451_v4 = vsel %vm1433_vm1, %v1439_v61, -1e+30 }
 0x427   : > { %v1454_v6 = vsel %vm1314_vm12, %v1451_v4, -inf  ;;  %v1646_v4 = vld [vmem:[%s3083_s24] sm:$0xff] }
 0x42d   : > { %v1444_v1 = vpop.permute.xlu2 %1443 }
 0x42e   : > { %v1452_v3 = vsel %vm1434_vm0, %v1444_v1, -1e+30  ;;  %v1648_v1 = vld [vmem:[%s3083_s24 + $0x10] sm:$0xff] }
 0x42f   : > { %v1455_v5 = vsel %vm1314_vm12, %v1452_v3, -inf  ;;  %v1647_v3 = vld [vmem:[%s3083_s24 + $0x8] sm:$0xff] }
 0x430   : > { %v1457_v8 = vmax.f32 %v1454_v6, %v1455_v5 }
 0x44d   : > { %v1449_v7 = vpop.permute.xlu0 %1448 }
 0x44e   : > { %v1453_v9 = vsel %vm1435_vm4, %v1449_v7, -1e+30 }
 0x44f   : > { %v1456_v10 = vsel %vm1314_vm12, %v1453_v9, -inf }
 0x450   : > { %v1458_v11 = vmax.f32 %v1457_v8, %v1456_v10 }
 0x452   : > { %v1459_v12 = vrot.slane %v1458_v11, 4 }
 0x454   : > { %v1460_v13 = vmax.f32 %v1458_v11, %v1459_v12 }
 0x456   : > { %v1461_v14 = vrot.slane %v1460_v13, 2 }
 0x458   : > { %v1462_v15 = vmax.f32 %v1460_v13, %v1461_v14  ;;  %v2176_v14 = vld [vmem:[%s978_s2] ss:$0 sm:$0xff] }
 0x45a   : > { %v1463_v16 = vrot.slane %v1462_v15, 1 }
 0x45c   : > { %v1464_v17 = vmax.f32 %v1462_v15, %v1463_v16  ;;  %v1690_v15 = vpop.f32.mrf.mxu0 }
 0x45e   : > { %v1467_v18 = vmul.f32 %v1464_v17, %v1432_v2  ;;  %v1465_v19 = vmul.f32 %v1464_v17, %v1430_v0  ;;  %v1466_v22 = vmul.f32 %v1464_v17, %v1431_v63  ;;  %v1583_v63 = vld [vmem:[%s3077_s22 + $0x18] sm:$0xff]  ;;  %v1582_v0 = vld [vmem:[%s3077_s22 + $0x10] sm:$0xff]  ;;  %v1581_v2 = vld [vmem:[%s3077_s22 + $0x8] sm:$0xff] }
 0x45f   : > { %1602 = vmatpush.msra.mxu1 %v1583_v63 }
 0x460   : > { %v1474_v20 = vsel %vm1314_vm12, %v1467_v18, 0.0  ;;  %v1468_v21 = vsel %vm1314_vm12, %v1465_v19, 0.0  ;;  %v1471_v23 = vsel %vm1314_vm12, %v1466_v22, 0.0 }
 0x461   : > { %1475 = vadd.xlane.f32.xlu1 %v1474_v20  ;;  %1469 = vadd.xlane.f32.xlu2 %v1468_v21 }
 0x462   : > { %1603 = vmatpush.msra.mxu1 %v1582_v0 }
 0x464   : > { %1604 = vmatpush.msra.mxu1 %v1581_v2 }
 0x469   : > { %1472 = vadd.xlane.f32.xlu1 %v1471_v23 }
 0x4d4   : > { %v1476_v24 = vpop.xlane.xlu1 %1475  ;;  %v1470_v25 = vpop.xlane.xlu2 %1469 }
 0x4d5   : > { %v1479_v26 = vsub.f32 %v1427_v60, %v1476_v24  ;;  %v1477_v27 = vsub.f32 %v1421_v57, %v1470_v25  ;;  %v1577_v57 = vld [vmem:[%s3068_s1 + $0x8] sm:$0xff] }
 0x4d7   : > { %v1484_v28 = vmul.f32 1.442695, %v1479_v26  ;;  %v1480_v29 = vmul.f32 1.442695, %v1477_v27  ;;  %v1693_v26 = vpop.f32.mrf.mxu0 }
 0x4d9   : > { %2183 = vpow2.f32 %v1484_v28 }
 0x4da   : > { %2185 = vpow2.f32 %v1480_v29 }
 0x4dc   : > { %v1473_v30 = vpop.xlane.xlu1 %1472 }
 0x4dd   : > { %v1478_v31 = vsub.f32 %v1424_v59, %v1473_v30 }
 0x4df   : > { %v2184_v32 = vpop.eup %2183  ;;  %v1482_v33 = vmul.f32 1.442695, %v1478_v31 }
 0x4e0   : > { %v2186_v35 = vpop.eup %2185  ;;  %1498 = vperm.xlu1 %2169, %v2184_v32   ;;  %v1534_v36 = vpack.c.bf16 %v2184_v32, %v2184_v32 }
 0x4e1   : > { %2187 = vpow2.f32 %v1482_v33  ;;  %1488 = vperm.xlu0 %2168, %v2186_v35  }
 0x4e2   : > { %v1536_v37 = vsel %vm1515_vm5, %v1534_v36, 0 }
 0x4e3   : > { %1544 = vmatpush.bf16.msrb.mxu3 %v1536_v37 }
 0x4e7   : > { %v2188_v40 = vpop.eup %2187 }
 0x4e8   : > { %1493 = vperm.xlu1 %2169, %v2188_v40   ;;  %v1533_v41 = vpack.c.bf16 %v2188_v40, %v2186_v35 }
 0x4ea   : > { %1545 = vmatpush.bf16.msrb.mxu3 %v1533_v41 }
 0x4ed   : > { %2070 = vmatmul.msk.bf16.vlgmr.msrb.gmra.mxu3 %vm1511_vm6, %v2068_v43 }
 0x552   : > { %v1499_v44 = vpop.permute.xlu1 %1498 }
 0x553   : > { %v1503_v45 = vmul.f32 %v1499_v44, %v3215_v48  ;;  %v1489_v49 = vpop.permute.xlu0 %1488  ;;  %v1576_v48 = vld [vmem:[%s3068_s1] sm:$0xff]  ;;  %s3377_s1 = scalar_lea.vmem [#allocation12], %s3042_s28 }
 0x554   : > { %v1501_v51 = vmul.f32 %v1489_v49, %v3208_v34  ;;  %v2174_v5 = vld [vmem:[%s3377_s1] ss:$0 sm:$0xff] }
 0x555   : > { %v1505_v46 = vpack.c.bf16 %v1503_v45, %v1503_v45 }
 0x557   : > { %v1517_v47 = vsel %vm1515_vm5, %v1505_v46, 0 }
 0x558   : > { %1525 = vmatpush.bf16.msrb.mxu2 %v1517_v47 }
 0x55a   : > { %v1494_v50 = vpop.permute.xlu1 %1493 }
 0x55b   : > { %v1502_v52 = vmul.f32 %v1494_v50, %v3211_v42 }
 0x55d   : > { %v1504_v54 = vpack.c.bf16 %v1502_v52, %v1501_v51 }
 0x55f   : > { %1526 = vmatpush.bf16.msrb.mxu2 %v1504_v54 }
 0x562   : > { %2069 = vmatmul.msk.bf16.vlgmr.msrb.gmra.mxu2 %vm1511_vm6, %v2068_v43 }
 0x563   : > { %1625 = vmatpush.msra.mxu2 %v1579_v55 }
 0x565   : > { %1626 = vmatpush.msra.mxu2 %v1578_v56 }
 0x567   : > { %1627 = vmatpush.msra.mxu2 %v1577_v57 }
 0x569   : > { %1628 = vmatpush.msra.mxu2 %v1576_v48 }
 0x570   : > { %v1547_v59 = vpop.f32.mrf.mxu3 }
 0x571   : > { %vm1552_vm7 = vcmp.gt.f32.partialorder %v1547_v59, 0.0 }
 0x572   : > { %v1554_v60 = vsel %vm1552_vm7, %v1547_v59, 1.0  ;;  %2073 = vmatmul.msk.f32.vlgmr.msra.gmra.mxu2 %vm1124_vm2, %v3145_v53  ;;  %v1649_v53 = vld [vmem:[%s3083_s24 + $0x18] sm:$0xff] }
 0x573   : > { %2189 = vrcp.f32 %v1554_v60  ;;  %1662 = vmatpush.msra.mxu3 %v1649_v53 }
 0x575   : > { %1663 = vmatpush.msra.mxu3 %v1648_v1 }
 0x577   : > { %1664 = vmatpush.msra.mxu3 %v1647_v3 }
 0x578   : > { %v1549_v34 = vpop.f32.mrf.mxu3 }
 0x579   : > { %v2190_v42 = vpop.eup %2189  ;;  %vm1553_vm8 = vcmp.gt.f32.partialorder %v1549_v34, 0.0  ;;  %1665 = vmatpush.msra.mxu3 %v1646_v4 }
 0x57a   : > { %v1555_v61 = vsel %vm1553_vm8, %v1549_v34, 1.0  ;;  %2074 = vmatmul.msk.f32.gmra.mxu2 %vm1124_vm2, %v3151_v58  ;;  %1560 = vperm.xlu2 %2167, %v2190_v42   ;;  %v1580_v58 = vld [vmem:[%s3077_s22] sm:$0xff]  ;;  %s3378_s22 = scalar_lea.vmem [#allocation19], %s3042_s28 }
 0x57b   : > { %2191 = vrcp.f32 %v1555_v61  ;;  %1605 = vmatpush.msra.mxu1 %v1580_v58  ;;  %v2175_v23 = vld [vmem:[%s3378_s22] ss:$0 sm:$0xff] }
 0x581   : > { %v2192_v62 = vpop.eup %2191 }
 0x582   : > { %1565 = vperm.xlu0 %2168, %v2192_v62  }
 0x5d4   : > { %v1561_v6 = vpop.permute.xlu2 %1560 }
 0x5e5   : > { %v1528_v7 = vpop.f32.mrf.mxu2 }
 0x5e6   : > { %v1568_v8 = vmul.f32 %v1561_v6, %v1528_v7 }
 0x5e8   : > { %v1574_v9 = vadd.f32 %v2174_v5, %v1568_v8 }
 0x5ea   : > { %2071 = vmatmul.msk.f32.vlgmr.msra.gmra.mxu1 %vm1124_vm2, %v1574_v9  ;;  %2075 = vmatmul.msk.f32.vlgmr.msra.gmra.mxu3 %vm1124_vm2, %v1574_v9 }
 0x5ed   : > { %v1530_v10 = vpop.f32.mrf.mxu2 }
 0x5f4   : > { %v1566_v11 = vpop.permute.xlu0 %1565 }
 0x5f5   : > { %v1569_v12 = vmul.f32 %v1566_v11, %v1530_v10  ;;  %v1630_v21 = vpop.f32.mrf.mxu2 }
 0x5f7   : > { %v1575_v13 = vadd.f32 %v2174_v5, %v1569_v12 }
 0x5f9   : > { %2072 = vmatmul.msk.f32.gmra.mxu1 %vm1124_vm2, %v1575_v13  ;;  %2076 = vmatmul.msk.f32.gmra.mxu3 %vm1124_vm2, %v1575_v13 }
 0x5fd   : > { %v1633_v36 = vpop.f32.mrf.mxu2 }
 0x667   : > { %v1607_v20 = vpop.f32.mrf.mxu1 }
 0x668   : > { %v1631_v22 = vadd.f32 %v1630_v21, %v1607_v20 }
 0x66a   : > { %v1640_v27 = vadd.f32 %v2175_v23, %v1631_v22 }
 0x66d   : > { %v1667_v16 = vpop.f32.mrf.mxu3 }
 0x66e   : > { %v1691_v17 = vadd.f32 %v1690_v15, %v1667_v16 }
 0x670   : > { %v1700_v18 = vadd.f32 %v2176_v14, %v1691_v17 }
 0x672   : > { %v1704_v19 = vmul.f32 1.442695, %v1700_v18  ;;  %vm1702_vm9 = vcmp.gt.f32.partialorder %v1700_v18, 0.0 }
 0x674   : > { %2193 = vpow2.f32 %v1704_v19 }
 0x676   : > { %v1610_v35 = vpop.f32.mrf.mxu1 }
 0x677   : > { %v1634_v37 = vadd.f32 %v1633_v36, %v1610_v35 }
 0x679   : > { %v1641_v40 = vadd.f32 %v2175_v23, %v1634_v37 }
 0x67a   : > { %v2194_v24 = vpop.eup %2193 }
 0x67b   : > { %v2079_v25 = vadd.f32 -1.0, %v2194_v24 }
 0x67c   : > { %v1670_v28 = vpop.f32.mrf.mxu3 }
 0x67d   : > { %v1710_v29 = vsel %vm1702_vm9, %v1700_v18, %v2079_v25  ;;  %v1694_v30 = vadd.f32 %v1693_v26, %v1670_v28 }
 0x67e   : > { %v1712_v31 = vmul.f32 %v1710_v29, %v1640_v27 }
 0x67f   : > { %v1701_v32 = vadd.f32 %v2176_v14, %v1694_v30 }
 0x680   : > { %1714 = vst.msk [vmem:[%s3369_s8] sm:$0xff] %vm1124_vm2, %v1712_v31 }
 0x681   : > { %v1706_v33 = vmul.f32 1.442695, %v1701_v32  ;;  %vm1703_vm10 = vcmp.gt.f32.partialorder %v1701_v32, 0.0 }
 0x683   : > { %2195 = vpow2.f32 %v1706_v33 }
 0x689   : > { %v2196_v38 = vpop.eup %2195 }
 0x68a   : > { %v2080_v39 = vadd.f32 -1.0, %v2196_v38 }
 0x68c   : > { %v1711_v41 = vsel %vm1703_vm10, %v1701_v32, %v2080_v39 }
 0x68d   : > { %v1713_v43 = vmul.f32 %v1711_v41, %v1641_v40 }
 0x68f   : > { %1715 = vst.msk [vmem:[%s3369_s8 + $0x8] sm:$0xf] %vm1128_vm3, %v1713_v43 }
 0x690 PF: > { %s3379_s24 = sld [smem:[#allocation32_spill]] }
 0x691   : > { %s3380_s1 = sld [smem:[#allocation29_spill]] }
 0x692   : > { %s3381_s22 = sld [smem:[#allocation30_spill]] }
 0x693   : > { %s3382_s23 = sld [smem:[#allocation33_spill]] }
 0x696   : > { %p46_p5 = scmp.ge.s32.totalorder %s3379_s24, 5  }
 0x698   :  { %48 = sbr.rel (!%p46_p5) target bundleno = 29 (0x1d), region = 285 }
 0x69d   :  { %1727 = vsyncpa [#allocation3], 1 }
 0x69e   :  { %1729 = vsyncpa [#allocation3 + $0x1], 1 }
 0x69f   :  { %1730 = vsyncpa [#allocation5], 1 }
 0x6a0   :  { %1732 = vsyncpa [#allocation5 + $0x1], 1 }
 0x6a1   :  { %1733 = vsyncpa [#allocation8], 1 }
 0x6a2   :  { %1735 = vsyncpa [#allocation8 + $0x1], 1 }
 0x6a3   :  { %1736 = vsyncpa [#allocation11], 1 }
 0x6a4   :  { %1738 = vsyncpa [#allocation11 + $0x1], 1 }
 0x6a5   :  { %1739 = vsyncpa [#allocation14], 1 }
 0x6a6   :  { %1741 = vsyncpa [#allocation14 + $0x1], 1 }
 0x6a7   :  { %1742 = vsyncpa [#allocation17], 1 }
 0x6a8   :  { %1744 = vsyncpa [#allocation17 + $0x1], 1 }
 0x6a9   :  { %1745 = vsyncpa [#allocation20], 1 }
 0x6aa   :  { %1747 = vsyncpa [#allocation20 + $0x1], 1 }

</bundles_post_ra>
